<compile_context>
chip_gen: v7x
topology: tpu7x:2x2x1
jax: 0.10.0
libtpu: 0.0.40
codegen_flags: <defaults>
</compile_context>

<pallas_src>
import functools

import jax
import jax.numpy as jnp
from jax.experimental import pallas as pl
from jax.experimental.pallas import tpu as pltpu

_HALF_LOG_TWO_PI = 0.9189385332046727  # 0.5 * log(2*pi)


def _lgamma_pos(z):
    """lgamma(z) for z > 0 via a Stirling series on an argument shifted to >= 8.

    f32-friendly (no cancelling Lanczos partial fractions) and cheap on the
    EUP: 2 logs + 1 approximate reciprocal per call; the rest is VPU work.
    """
    small = z < 8.0
    # Shift product z*(z+1)*...*(z+7); only used where z < 8, so a (harmless)
    # overflow for very large z is discarded by the select below.
    prod = z
    zk = z
    for _ in range(7):
        zk = zk + 1.0
        prod = prod * zk
    shift_log = jnp.log(jnp.where(small, prod, 1.0))
    zz = jnp.where(small, z + 8.0, z)

    inv = pl.reciprocal(zz, approx=True)  # only feeds the small correction term
    r = inv * inv
    series = inv * (0.08333333333333333
                    + r * (-0.002777777777777778
                           + r * 0.0007936507936507937))
    return (zz - 0.5) * jnp.log(zz) - zz + _HALF_LOG_TWO_PI + series - shift_log


def _zinb_kernel(x_ref, mean_ref, disp_ref, pi_ref, sf_ref, out_ref, *,
                 ridge_lambda, tm, gp, n_rows, n_cols):
    eps = 1e-10

    x = x_ref[...].astype(jnp.float32)
    mean = mean_ref[...].astype(jnp.float32) * sf_ref[...].astype(jnp.float32)
    disp = disp_ref[...].astype(jnp.float32)
    pi = pi_ref[...].astype(jnp.float32)

    disp_e = disp + eps
    # Shared log terms:
    #   log(1 + mean/(disp+eps))       == ldm - ld
    #   log(disp/(disp+mean+eps))      ~= ld - ldm   (eps-level difference only)
    ld = jnp.log(disp_e)
    ldm = jnp.log(disp + mean + eps)
    lm = jnp.log(mean + eps)

    t1 = _lgamma_pos(disp_e) + _lgamma_pos(x + 1.0) - _lgamma_pos(x + disp_e)
    t2 = (disp + x) * (ldm - ld) + x * (ld - lm)
    nb_case = t1 + t2 - jnp.log(1.0 - pi + eps)

    zero_nb = jnp.exp(disp * (ld - ldm))  # == (disp/(disp+mean+eps))**disp
    zero_case = -jnp.log(pi + (1.0 - pi) * zero_nb + eps)

    result = jnp.where(x <= 1e-8, zero_case, nb_case)
    if ridge_lambda > 0.0:
        result = result + ridge_lambda * (pi * pi)

    # Mask out padded rows / genes (trace-time no-op when shapes are aligned).
    mask = None
    if n_rows % tm != 0:
        row_ids = pl.program_id(0) * tm + jax.lax.broadcasted_iota(
            jnp.int32, (tm, gp), 0)
        mask = row_ids < n_rows
    if n_cols != gp:
        col_ids = jax.lax.broadcasted_iota(jnp.int32, (tm, gp), 1)
        cmask = col_ids < n_cols
        mask = cmask if mask is None else jnp.logical_and(mask, cmask)
    if mask is not None:
        result = jnp.where(mask, result, 0.0)

    # Lane-block partial sums: (tm, gp) -> (tm, 128) with pure VPU vreg adds,
    # then one sublane reduce to the lane-dense (1, 128) per-block output.
    s = result[:, 0:128]
    for j in range(1, gp // 128):
        s = s + result[:, j * 128:(j + 1) * 128]
    out_ref[...] = jnp.sum(s, axis=0, keepdims=True)


def _round_up(a, b):
    return ((a + b - 1) // b) * b


def zinb_loss(x, mean, disp, pi, scale_factor, ridge_lambda=0.0, tm=None,
              vmem_tile_budget_bytes=24 * 1024 * 1024):
    """Mean ZINB loss over all N*G elements (matches the torch reference)."""

    def prep(a):
        a = jnp.asarray(a)
        if a.dtype not in (jnp.float32, jnp.bfloat16):
            a = a.astype(jnp.float32)
        return a

    x, mean, disp, pi = prep(x), prep(mean), prep(disp), prep(pi)
    N, G = x.shape
    sf = prep(scale_factor).reshape(N, 1)

    Gp = _round_up(G, 128)  # lane-dense gene axis

    if tm is None:
        # Target ~1-2 MiB per (tm, Gp) f32 block: budget / (2x-buffered inputs
        # + ~dozen live f32 temporaries) ~= budget / 80 bytes per element.
        tile_elems = max(8 * 128, vmem_tile_budget_bytes // 80)
        tm = tile_elems // Gp
    tm = max(8, min(int(tm), 512, _round_up(N, 8)))
    tm = _round_up(tm, 8)

    Np = _round_up(N, tm)
    num_blocks = Np // tm

    pad_r, pad_c = Np - N, Gp - G
    if pad_r or pad_c:
        # Safe pad values (finite math everywhere); masked out inside kernel.
        x = jnp.pad(x, ((0, pad_r), (0, pad_c)))
        mean = jnp.pad(mean, ((0, pad_r), (0, pad_c)), constant_values=1.0)
        disp = jnp.pad(disp, ((0, pad_r), (0, pad_c)), constant_values=1.0)
        pi = jnp.pad(pi, ((0, pad_r), (0, pad_c)), constant_values=0.5)
        sf = jnp.pad(sf, ((0, pad_r), (0, 0)), constant_values=1.0)

    kernel = functools.partial(
        _zinb_kernel,
        ridge_lambda=float(ridge_lambda),
        tm=tm, gp=Gp, n_rows=N, n_cols=G,
    )

    row_spec = pl.BlockSpec((tm, Gp), lambda i: (i, 0))
    sf_spec = pl.BlockSpec((tm, 1), lambda i: (i, 0))
    out_spec = pl.BlockSpec((None, 1, 128), lambda i: (i, 0, 0))

    partials = pl.pallas_call(
        kernel,
        out_shape=jax.ShapeDtypeStruct((num_blocks, 1, 128), jnp.float32),
        grid_spec=pltpu.PrefetchScalarGridSpec(
            num_scalar_prefetch=0,
            grid=(num_blocks,),
            in_specs=[row_spec, row_spec, row_spec, row_spec, sf_spec],
            out_specs=out_spec,
        ),
        compiler_params=pltpu.CompilerParams(
            dimension_semantics=("parallel",),
            vmem_limit_bytes=48 * 1024 * 1024,
        ),
    )(x, mean, disp, pi, sf)

    # Tiny final reduction + mean in XLA (divide by the *unpadded* count).
    return jnp.sum(partials) * (1.0 / float(N * G))


# --- Pure-JAX reference (for sanity check) ------------------------------------
def zinb_loss_ref(x, mean, disp, pi, scale_factor, ridge_lambda=0.0):
    eps = 1e-10
    sf = scale_factor[:, None]
    mean = mean * sf
    lg = jax.scipy.special.gammaln
    t1 = lg(disp + eps) + lg(x + 1.0) - lg(x + disp + eps)
    t2 = ((disp + x) * jnp.log(1.0 + mean / (disp + eps))
          + x * (jnp.log(disp + eps) - jnp.log(mean + eps)))
    nb_final = t1 + t2
    nb_case = nb_final - jnp.log(1.0 - pi + eps)
    zero_nb = jnp.power(disp / (disp + mean + eps), disp)
    zero_case = -jnp.log(pi + (1.0 - pi) * zero_nb + eps)
    result = jnp.where(x <= 1e-8, zero_case, nb_case)
    if ridge_lambda > 0:
        result = result + ridge_lambda * jnp.square(pi)
    return jnp.mean(result)


if __name__ == "__main__":
    key = jax.random.PRNGKey(0)
    k1, k2, k3, k4, k5 = jax.random.split(key, 5)

    N, G = 48, 200  # deliberately non-aligned: exercises gene padding + masks
    x = jnp.floor(jax.random.exponential(k1, (N, G)) * 3.0).astype(jnp.float32)
    mean = jax.nn.softplus(jax.random.normal(k2, (N, G))) + 0.1
    disp = jax.nn.softplus(jax.random.normal(k3, (N, G))) + 0.1
    pi = jax.nn.sigmoid(jax.random.normal(k4, (N, G)))
    scale_factor = jnp.exp(0.2 * jax.random.normal(k5, (N,)))

    def check(got, want, label):
        got, want = float(got), float(want)
        assert jnp.isfinite(got), f"{label}: non-finite loss {got}"
        assert abs(got - want) < 1e-3 * (1.0 + abs(want)), (
            f"{label}: kernel={got} ref={want}")

    # multi-block grid (3 row tiles) + gene-axis masking
    loss = jax.block_until_ready(
        zinb_loss(x, mean, disp, pi, scale_factor, ridge_lambda=0.0, tm=16))
    check(loss, zinb_loss_ref(x, mean, disp, pi, scale_factor, 0.0), "tm=16")

    # ragged row tile (row + gene masking) + ridge term
    loss_r = jax.block_until_ready(
        zinb_loss(x, mean, disp, pi, scale_factor, ridge_lambda=0.3, tm=32))
    check(loss_r, zinb_loss_ref(x, mean, disp, pi, scale_factor, 0.3), "tm=32")

    # auto (VMEM-budgeted) tile size
    loss_a = jax.block_until_ready(
        zinb_loss(x, mean, disp, pi, scale_factor, ridge_lambda=0.0))
    check(loss_a, zinb_loss_ref(x, mean, disp, pi, scale_factor, 0.0), "auto")

    print("KERNEL_OK")
</pallas_src>

<mosaic_0001>
module attributes {stable_mosaic.version = 11 : i64} {
  func.func @_zinb_kernel(%arg0: i32, %arg1: memref<16x256xf32, #tpu.memory_space<vmem>>, %arg2: memref<16x256xf32, #tpu.memory_space<vmem>>, %arg3: memref<16x256xf32, #tpu.memory_space<vmem>>, %arg4: memref<16x256xf32, #tpu.memory_space<vmem>>, %arg5: memref<16x1xf32, #tpu.memory_space<vmem>>, %arg6: memref<1x1x128xf32, #tpu.memory_space<vmem>>) attributes {dimension_semantics = [#tpu.dimension_semantics<parallel>], iteration_bounds = array<i64: 3>, scalar_prefetch = 0 : i64, scratch_operands = 0 : i64, tpu.core_type = #tpu.core_type<tc>, window_params = [{transform_indices = @transform_0, window_bounds = array<i64: 16, 256>}, {transform_indices = @transform_1, window_bounds = array<i64: 16, 256>}, {transform_indices = @transform_2, window_bounds = array<i64: 16, 256>}, {transform_indices = @transform_3, window_bounds = array<i64: 16, 256>}, {transform_indices = @transform_4, window_bounds = array<i64: 16, 1>}, {transform_indices = @transform_5, window_bounds = array<i64: 1, 1, 128>}]} {
    %c0 = arith.constant 0 : index
    %c0_0 = arith.constant 0 : index
    %0 = vector.load %arg1[%c0, %c0_0] : memref<16x256xf32, #tpu.memory_space<vmem>>, vector<16x256xf32>
    %c0_1 = arith.constant 0 : index
    %c0_2 = arith.constant 0 : index
    %1 = vector.load %arg2[%c0_1, %c0_2] : memref<16x256xf32, #tpu.memory_space<vmem>>, vector<16x256xf32>
    %c0_3 = arith.constant 0 : index
    %c0_4 = arith.constant 0 : index
    %2 = vector.load %arg5[%c0_3, %c0_4] : memref<16x1xf32, #tpu.memory_space<vmem>>, vector<16x1xf32>
    %3 = vector.broadcast %2 : vector<16x1xf32> to vector<16x256xf32>
    %4 = arith.mulf %1, %3 : vector<16x256xf32>
    %c0_5 = arith.constant 0 : index
    %c0_6 = arith.constant 0 : index
    %5 = vector.load %arg3[%c0_5, %c0_6] : memref<16x256xf32, #tpu.memory_space<vmem>>, vector<16x256xf32>
    %c0_7 = arith.constant 0 : index
    %c0_8 = arith.constant 0 : index
    %6 = vector.load %arg4[%c0_7, %c0_8] : memref<16x256xf32, #tpu.memory_space<vmem>>, vector<16x256xf32>
    %cst = arith.constant 1.000000e-10 : f32
    %7 = vector.broadcast %cst : f32 to vector<16x256xf32>
    %8 = arith.addf %5, %7 : vector<16x256xf32>
    %9 = math.log %8 : vector<16x256xf32>
    %10 = arith.addf %5, %4 : vector<16x256xf32>
    %cst_9 = arith.constant 1.000000e-10 : f32
    %11 = vector.broadcast %cst_9 : f32 to vector<16x256xf32>
    %12 = arith.addf %10, %11 : vector<16x256xf32>
    %13 = math.log %12 : vector<16x256xf32>
    %cst_10 = arith.constant 1.000000e-10 : f32
    %14 = vector.broadcast %cst_10 : f32 to vector<16x256xf32>
    %15 = arith.addf %4, %14 : vector<16x256xf32>
    %16 = math.log %15 : vector<16x256xf32>
    %cst_11 = arith.constant 8.000000e+00 : f32
    %17 = vector.broadcast %cst_11 : f32 to vector<16x256xf32>
    %18 = arith.cmpf olt, %8, %17 : vector<16x256xf32>
    %cst_12 = arith.constant 1.000000e+00 : f32
    %19 = vector.broadcast %cst_12 : f32 to vector<16x256xf32>
    %20 = arith.addf %8, %19 : vector<16x256xf32>
    %21 = arith.mulf %8, %20 : vector<16x256xf32>
    %cst_13 = arith.constant 1.000000e+00 : f32
    %22 = vector.broadcast %cst_13 : f32 to vector<16x256xf32>
    %23 = arith.addf %20, %22 : vector<16x256xf32>
    %24 = arith.mulf %21, %23 : vector<16x256xf32>
    %cst_14 = arith.constant 1.000000e+00 : f32
    %25 = vector.broadcast %cst_14 : f32 to vector<16x256xf32>
    %26 = arith.addf %23, %25 : vector<16x256xf32>
    %27 = arith.mulf %24, %26 : vector<16x256xf32>
    %cst_15 = arith.constant 1.000000e+00 : f32
    %28 = vector.broadcast %cst_15 : f32 to vector<16x256xf32>
    %29 = arith.addf %26, %28 : vector<16x256xf32>
    %30 = arith.mulf %27, %29 : vector<16x256xf32>
    %cst_16 = arith.constant 1.000000e+00 : f32
    %31 = vector.broadcast %cst_16 : f32 to vector<16x256xf32>
    %32 = arith.addf %29, %31 : vector<16x256xf32>
    %33 = arith.mulf %30, %32 : vector<16x256xf32>
    %cst_17 = arith.constant 1.000000e+00 : f32
    %34 = vector.broadcast %cst_17 : f32 to vector<16x256xf32>
    %35 = arith.addf %32, %34 : vector<16x256xf32>
    %36 = arith.mulf %33, %35 : vector<16x256xf32>
    %cst_18 = arith.constant 1.000000e+00 : f32
    %37 = vector.broadcast %cst_18 : f32 to vector<16x256xf32>
    %38 = arith.addf %35, %37 : vector<16x256xf32>
    %39 = arith.mulf %36, %38 : vector<16x256xf32>
    %cst_19 = arith.constant 1.000000e+00 : f32
    %40 = vector.broadcast %cst_19 : f32 to vector<16x256xf32>
    %41 = arith.select %18, %39, %40 : vector<16x256xi1>, vector<16x256xf32>
    %42 = math.log %41 : vector<16x256xf32>
    %cst_20 = arith.constant 8.000000e+00 : f32
    %43 = vector.broadcast %cst_20 : f32 to vector<16x256xf32>
    %44 = arith.addf %8, %43 : vector<16x256xf32>
    %45 = arith.select %18, %44, %8 : vector<16x256xi1>, vector<16x256xf32>
    %46 = tpu.reciprocal %45 {approx = true} : vector<16x256xf32> -> vector<16x256xf32>
    %47 = arith.mulf %46, %46 : vector<16x256xf32>
    %cst_21 = arith.constant 7.93650805E-4 : f32
    %48 = vector.broadcast %cst_21 : f32 to vector<16x256xf32>
    %49 = arith.mulf %47, %48 : vector<16x256xf32>
    %cst_22 = arith.constant -0.00277777785 : f32
    %50 = vector.broadcast %cst_22 : f32 to vector<16x256xf32>
    %51 = arith.addf %50, %49 : vector<16x256xf32>
    %52 = arith.mulf %47, %51 : vector<16x256xf32>
    %cst_23 = arith.constant 0.0833333358 : f32
    %53 = vector.broadcast %cst_23 : f32 to vector<16x256xf32>
    %54 = arith.addf %53, %52 : vector<16x256xf32>
    %55 = arith.mulf %46, %54 : vector<16x256xf32>
    %cst_24 = arith.constant 5.000000e-01 : f32
    %56 = vector.broadcast %cst_24 : f32 to vector<16x256xf32>
    %57 = arith.subf %45, %56 : vector<16x256xf32>
    %58 = math.log %45 : vector<16x256xf32>
    %59 = arith.mulf %57, %58 : vector<16x256xf32>
    %60 = arith.subf %59, %45 : vector<16x256xf32>
    %cst_25 = arith.constant 0.918938517 : f32
    %61 = vector.broadcast %cst_25 : f32 to vector<16x256xf32>
    %62 = arith.addf %60, %61 : vector<16x256xf32>
    %63 = arith.addf %62, %55 : vector<16x256xf32>
    %64 = arith.subf %63, %42 : vector<16x256xf32>
    %cst_26 = arith.constant 1.000000e+00 : f32
    %65 = vector.broadcast %cst_26 : f32 to vector<16x256xf32>
    %66 = arith.addf %0, %65 : vector<16x256xf32>
    %cst_27 = arith.constant 8.000000e+00 : f32
    %67 = vector.broadcast %cst_27 : f32 to vector<16x256xf32>
    %68 = arith.cmpf olt, %66, %67 : vector<16x256xf32>
    %cst_28 = arith.constant 1.000000e+00 : f32
    %69 = vector.broadcast %cst_28 : f32 to vector<16x256xf32>
    %70 = arith.addf %66, %69 : vector<16x256xf32>
    %71 = arith.mulf %66, %70 : vector<16x256xf32>
    %cst_29 = arith.constant 1.000000e+00 : f32
    %72 = vector.broadcast %cst_29 : f32 to vector<16x256xf32>
    %73 = arith.addf %70, %72 : vector<16x256xf32>
    %74 = arith.mulf %71, %73 : vector<16x256xf32>
    %cst_30 = arith.constant 1.000000e+00 : f32
    %75 = vector.broadcast %cst_30 : f32 to vector<16x256xf32>
    %76 = arith.addf %73, %75 : vector<16x256xf32>
    %77 = arith.mulf %74, %76 : vector<16x256xf32>
    %cst_31 = arith.constant 1.000000e+00 : f32
    %78 = vector.broadcast %cst_31 : f32 to vector<16x256xf32>
    %79 = arith.addf %76, %78 : vector<16x256xf32>
    %80 = arith.mulf %77, %79 : vector<16x256xf32>
    %cst_32 = arith.constant 1.000000e+00 : f32
    %81 = vector.broadcast %cst_32 : f32 to vector<16x256xf32>
    %82 = arith.addf %79, %81 : vector<16x256xf32>
    %83 = arith.mulf %80, %82 : vector<16x256xf32>
    %cst_33 = arith.constant 1.000000e+00 : f32
    %84 = vector.broadcast %cst_33 : f32 to vector<16x256xf32>
    %85 = arith.addf %82, %84 : vector<16x256xf32>
    %86 = arith.mulf %83, %85 : vector<16x256xf32>
    %cst_34 = arith.constant 1.000000e+00 : f32
    %87 = vector.broadcast %cst_34 : f32 to vector<16x256xf32>
    %88 = arith.addf %85, %87 : vector<16x256xf32>
    %89 = arith.mulf %86, %88 : vector<16x256xf32>
    %cst_35 = arith.constant 1.000000e+00 : f32
    %90 = vector.broadcast %cst_35 : f32 to vector<16x256xf32>
    %91 = arith.select %68, %89, %90 : vector<16x256xi1>, vector<16x256xf32>
    %92 = math.log %91 : vector<16x256xf32>
    %cst_36 = arith.constant 8.000000e+00 : f32
    %93 = vector.broadcast %cst_36 : f32 to vector<16x256xf32>
    %94 = arith.addf %66, %93 : vector<16x256xf32>
    %95 = arith.select %68, %94, %66 : vector<16x256xi1>, vector<16x256xf32>
    %96 = tpu.reciprocal %95 {approx = true} : vector<16x256xf32> -> vector<16x256xf32>
    %97 = arith.mulf %96, %96 : vector<16x256xf32>
    %cst_37 = arith.constant 7.93650805E-4 : f32
    %98 = vector.broadcast %cst_37 : f32 to vector<16x256xf32>
    %99 = arith.mulf %97, %98 : vector<16x256xf32>
    %cst_38 = arith.constant -0.00277777785 : f32
    %100 = vector.broadcast %cst_38 : f32 to vector<16x256xf32>
    %101 = arith.addf %100, %99 : vector<16x256xf32>
    %102 = arith.mulf %97, %101 : vector<16x256xf32>
    %cst_39 = arith.constant 0.0833333358 : f32
    %103 = vector.broadcast %cst_39 : f32 to vector<16x256xf32>
    %104 = arith.addf %103, %102 : vector<16x256xf32>
    %105 = arith.mulf %96, %104 : vector<16x256xf32>
    %cst_40 = arith.constant 5.000000e-01 : f32
    %106 = vector.broadcast %cst_40 : f32 to vector<16x256xf32>
    %107 = arith.subf %95, %106 : vector<16x256xf32>
    %108 = math.log %95 : vector<16x256xf32>
    %109 = arith.mulf %107, %108 : vector<16x256xf32>
    %110 = arith.subf %109, %95 : vector<16x256xf32>
    %cst_41 = arith.constant 0.918938517 : f32
    %111 = vector.broadcast %cst_41 : f32 to vector<16x256xf32>
    %112 = arith.addf %110, %111 : vector<16x256xf32>
    %113 = arith.addf %112, %105 : vector<16x256xf32>
    %114 = arith.subf %113, %92 : vector<16x256xf32>
    %115 = arith.addf %64, %114 : vector<16x256xf32>
    %116 = arith.addf %0, %8 : vector<16x256xf32>
    %cst_42 = arith.constant 8.000000e+00 : f32
    %117 = vector.broadcast %cst_42 : f32 to vector<16x256xf32>
    %118 = arith.cmpf olt, %116, %117 : vector<16x256xf32>
    %cst_43 = arith.constant 1.000000e+00 : f32
    %119 = vector.broadcast %cst_43 : f32 to vector<16x256xf32>
    %120 = arith.addf %116, %119 : vector<16x256xf32>
    %121 = arith.mulf %116, %120 : vector<16x256xf32>
    %cst_44 = arith.constant 1.000000e+00 : f32
    %122 = vector.broadcast %cst_44 : f32 to vector<16x256xf32>
    %123 = arith.addf %120, %122 : vector<16x256xf32>
    %124 = arith.mulf %121, %123 : vector<16x256xf32>
    %cst_45 = arith.constant 1.000000e+00 : f32
    %125 = vector.broadcast %cst_45 : f32 to vector<16x256xf32>
    %126 = arith.addf %123, %125 : vector<16x256xf32>
    %127 = arith.mulf %124, %126 : vector<16x256xf32>
    %cst_46 = arith.constant 1.000000e+00 : f32
    %128 = vector.broadcast %cst_46 : f32 to vector<16x256xf32>
    %129 = arith.addf %126, %128 : vector<16x256xf32>
    %130 = arith.mulf %127, %129 : vector<16x256xf32>
    %cst_47 = arith.constant 1.000000e+00 : f32
    %131 = vector.broadcast %cst_47 : f32 to vector<16x256xf32>
    %132 = arith.addf %129, %131 : vector<16x256xf32>
    %133 = arith.mulf %130, %132 : vector<16x256xf32>
    %cst_48 = arith.constant 1.000000e+00 : f32
    %134 = vector.broadcast %cst_48 : f32 to vector<16x256xf32>
    %135 = arith.addf %132, %134 : vector<16x256xf32>
    %136 = arith.mulf %133, %135 : vector<16x256xf32>
    %cst_49 = arith.constant 1.000000e+00 : f32
    %137 = vector.broadcast %cst_49 : f32 to vector<16x256xf32>
    %138 = arith.addf %135, %137 : vector<16x256xf32>
    %139 = arith.mulf %136, %138 : vector<16x256xf32>
    %cst_50 = arith.constant 1.000000e+00 : f32
    %140 = vector.broadcast %cst_50 : f32 to vector<16x256xf32>
    %141 = arith.select %118, %139, %140 : vector<16x256xi1>, vector<16x256xf32>
    %142 = math.log %141 : vector<16x256xf32>
    %cst_51 = arith.constant 8.000000e+00 : f32
    %143 = vector.broadcast %cst_51 : f32 to vector<16x256xf32>
    %144 = arith.addf %116, %143 : vector<16x256xf32>
    %145 = arith.select %118, %144, %116 : vector<16x256xi1>, vector<16x256xf32>
    %146 = tpu.reciprocal %145 {approx = true} : vector<16x256xf32> -> vector<16x256xf32>
    %147 = arith.mulf %146, %146 : vector<16x256xf32>
    %cst_52 = arith.constant 7.93650805E-4 : f32
    %148 = vector.broadcast %cst_52 : f32 to vector<16x256xf32>
    %149 = arith.mulf %147, %148 : vector<16x256xf32>
    %cst_53 = arith.constant -0.00277777785 : f32
    %150 = vector.broadcast %cst_53 : f32 to vector<16x256xf32>
    %151 = arith.addf %150, %149 : vector<16x256xf32>
    %152 = arith.mulf %147, %151 : vector<16x256xf32>
    %cst_54 = arith.constant 0.0833333358 : f32
    %153 = vector.broadcast %cst_54 : f32 to vector<16x256xf32>
    %154 = arith.addf %153, %152 : vector<16x256xf32>
    %155 = arith.mulf %146, %154 : vector<16x256xf32>
    %cst_55 = arith.constant 5.000000e-01 : f32
    %156 = vector.broadcast %cst_55 : f32 to vector<16x256xf32>
    %157 = arith.subf %145, %156 : vector<16x256xf32>
    %158 = math.log %145 : vector<16x256xf32>
    %159 = arith.mulf %157, %158 : vector<16x256xf32>
    %160 = arith.subf %159, %145 : vector<16x256xf32>
    %cst_56 = arith.constant 0.918938517 : f32
    %161 = vector.broadcast %cst_56 : f32 to vector<16x256xf32>
    %162 = arith.addf %160, %161 : vector<16x256xf32>
    %163 = arith.addf %162, %155 : vector<16x256xf32>
    %164 = arith.subf %163, %142 : vector<16x256xf32>
    %165 = arith.subf %115, %164 : vector<16x256xf32>
    %166 = arith.addf %5, %0 : vector<16x256xf32>
    %167 = arith.subf %13, %9 : vector<16x256xf32>
    %168 = arith.mulf %166, %167 : vector<16x256xf32>
    %169 = arith.subf %9, %16 : vector<16x256xf32>
    %170 = arith.mulf %0, %169 : vector<16x256xf32>
    %171 = arith.addf %168, %170 : vector<16x256xf32>
    %172 = arith.addf %165, %171 : vector<16x256xf32>
    %cst_57 = arith.constant 1.000000e+00 : f32
    %173 = vector.broadcast %cst_57 : f32 to vector<16x256xf32>
    %174 = arith.subf %173, %6 : vector<16x256xf32>
    %cst_58 = arith.constant 1.000000e-10 : f32
    %175 = vector.broadcast %cst_58 : f32 to vector<16x256xf32>
    %176 = arith.addf %174, %175 : vector<16x256xf32>
    %177 = math.log %176 : vector<16x256xf32>
    %178 = arith.subf %172, %177 : vector<16x256xf32>
    %179 = arith.subf %9, %13 : vector<16x256xf32>
    %180 = arith.mulf %5, %179 : vector<16x256xf32>
    %181 = math.exp %180 : vector<16x256xf32>
    %cst_59 = arith.constant 1.000000e+00 : f32
    %182 = vector.broadcast %cst_59 : f32 to vector<16x256xf32>
    %183 = arith.subf %182, %6 : vector<16x256xf32>
    %184 = arith.mulf %183, %181 : vector<16x256xf32>
    %185 = arith.addf %6, %184 : vector<16x256xf32>
    %cst_60 = arith.constant 1.000000e-10 : f32
    %186 = vector.broadcast %cst_60 : f32 to vector<16x256xf32>
    %187 = arith.addf %185, %186 : vector<16x256xf32>
    %188 = math.log %187 : vector<16x256xf32>
    %cst_61 = arith.constant 0.000000e+00 : f32
    %189 = vector.broadcast %cst_61 : f32 to vector<16x256xf32>
    %190 = arith.subf %189, %188 : vector<16x256xf32>
    %cst_62 = arith.constant 9.99999993E-9 : f32
    %191 = vector.broadcast %cst_62 : f32 to vector<16x256xf32>
    %192 = arith.cmpf ole, %0, %191 : vector<16x256xf32>
    %193 = arith.select %192, %190, %178 : vector<16x256xi1>, vector<16x256xf32>
    %194 = tpu.iota {dimensions = array<i32: 1>} : vector<16x256xi32>
    %c200_i32 = arith.constant 200 : i32
    %195 = vector.broadcast %c200_i32 : i32 to vector<16x256xi32>
    %196 = arith.cmpi slt, %194, %195 : vector<16x256xi32>
    %cst_63 = arith.constant 0.000000e+00 : f32
    %197 = vector.broadcast %cst_63 : f32 to vector<16x256xf32>
    %198 = arith.select %196, %193, %197 : vector<16x256xi1>, vector<16x256xf32>
    %199 = vector.extract_strided_slice %198 {offsets = [0, 0], sizes = [16, 128], strides = [1, 1]} : vector<16x256xf32> to vector<16x128xf32>
    %200 = vector.extract_strided_slice %198 {offsets = [0, 128], sizes = [16, 128], strides = [1, 1]} : vector<16x256xf32> to vector<16x128xf32>
    %201 = arith.addf %199, %200 : vector<16x128xf32>
    %cst_64 = arith.constant dense<0.000000e+00> : vector<128xf32>
    %202 = vector.multi_reduction <add>, %201, %cst_64 [0] : vector<16x128xf32> to vector<128xf32>
    %203 = vector.shape_cast %202 : vector<128xf32> to vector<1x128xf32>
    %c0_65 = arith.constant 0 : index
    %c0_66 = arith.constant 0 : index
    %c0_67 = arith.constant 0 : index
    %204 = vector.load %arg6[%c0_65, %c0_66, %c0_67] : memref<1x1x128xf32, #tpu.memory_space<vmem>>, vector<1x1x128xf32>
    %205 = vector.shape_cast %204 : vector<1x1x128xf32> to vector<1x128xf32>
    %206 = vector.shape_cast %203 : vector<1x128xf32> to vector<1x1x128xf32>
    tpu.vector_store %arg6[%c0_65, %c0_66, %c0_67], %206 {strides = array<i32>} : memref<1x1x128xf32, #tpu.memory_space<vmem>>, vector<1x1x128xf32>,
    return
  }
  func.func @transform_0(%arg0: i32) -> (i32, i32) {
    %c0_i32 = arith.constant 0 : i32
    %c0_i32_0 = arith.constant 0 : i32
    return %arg0, %c0_i32 : i32, i32
  }
  func.func @transform_1(%arg0: i32) -> (i32, i32) {
    %c0_i32 = arith.constant 0 : i32
    %c0_i32_0 = arith.constant 0 : i32
    return %arg0, %c0_i32 : i32, i32
  }
  func.func @transform_2(%arg0: i32) -> (i32, i32) {
    %c0_i32 = arith.constant 0 : i32
    %c0_i32_0 = arith.constant 0 : i32
    return %arg0, %c0_i32 : i32, i32
  }
  func.func @transform_3(%arg0: i32) -> (i32, i32) {
    %c0_i32 = arith.constant 0 : i32
    %c0_i32_0 = arith.constant 0 : i32
    return %arg0, %c0_i32 : i32, i32
  }
  func.func @transform_4(%arg0: i32) -> (i32, i32) {
    %c0_i32 = arith.constant 0 : i32
    %c0_i32_0 = arith.constant 0 : i32
    return %arg0, %c0_i32 : i32, i32
  }
  func.func @transform_5(%arg0: i32) -> (i32, i32, i32) {
    %c0_i32 = arith.constant 0 : i32
    %c0_i32_0 = arith.constant 0 : i32
    %c0_i32_1 = arith.constant 0 : i32
    return %arg0, %c0_i32, %c0_i32_0 : i32, i32, i32
  }
}

</mosaic_0001>

<bundles_post_ra>
// kernel: tpu_custom_call.1
= control target key start
LH: loop header
LB: loop body
LE: loop exit
PB: predicated region body
PF: predicated region fallthrough
CT: control target
= control target key end

     0   :  { %s2484_s0 = inlined_call_operand.hbm [shape: f32[48,256], index: 0, kind: input, shape index: {}]   ;;  %s2485_s1 = inlined_call_operand.hbm [shape: f32[48,256], index: 1, kind: input, shape index: {}]   ;;  %s2486_s2 = inlined_call_operand.hbm [shape: f32[48,256], index: 2, kind: input, shape index: {}]   ;;  %s2487_s3 = inlined_call_operand.hbm [shape: f32[48,256], index: 3, kind: input, shape index: {}]   ;;  %s2488_s4 = inlined_call_operand.vmem [shape: f32[48,1], index: 4, kind: input, shape index: {}]   ;;  %s2489_s5 = inlined_call_operand.hbm [shape: f32[3,1,128], index: 5, kind: output, shape index: {}]  }
   0x1   :  { %2513 = sst [smem:[#allocation31_spill]] %s2484_s0 }
   0x2   :  { %2514 = sst [smem:[#allocation32_spill]] %s2485_s1 }
   0x3   :  { %10 = vsyncpa [#allocation3], 0 }
   0x4   :  { %12 = vsyncpa [#allocation3 + $0x1], 0 }
   0x5   :  { %13 = vsyncpa [#allocation6], 0 }
   0x6   :  { %15 = vsyncpa [#allocation6 + $0x1], 0 }
   0x7   :  { %16 = vsyncpa [#allocation9], 0 }
   0x8   :  { %18 = vsyncpa [#allocation9 + $0x1], 0 }
   0x9   :  { %19 = vsyncpa [#allocation4], 0 }
   0xa   :  { %21 = vsyncpa [#allocation4 + $0x1], 0  ;;  %s1645_s18 = smov 0   ;;  %s1647_s19 = smov 0  }
   0xb   :  { %s1649_s20 = smov 0   ;;  %s1651_s21 = smov 0  }
   0xc LB: > { %2515 = sst [smem:[#allocation15_spill]] %s1601_s20  ;;  %s1666_s22 = sadd.s32 4294967295, %s1605_s21   ;;  %s1605_s21 = sphi %s1651_s21, %s2573_s21   ;;  %s1601_s20 = sphi %s1649_s20, %s2570_s20   ;;  %s1597_s19 = sphi %s1647_s19, %s2572_s19   ;;  %s1593_s18 = sphi %s1645_s18, %s2571_s18  }
   0xd   : > { %s1169_s23 = sadd.s32 4294967294, %s1605_s21   ;;  %s1670_s24 = sadd.s32 1, %s1605_s21  }
   0xe   : > { %s34_s25 = sadd.s32 1, %s1601_s20  ;;  %s31_s26 = ssub.s32 %s1605_s21, %s1670_s24 }
   0xf   : > { %p41_p0 = scmp.ne.s32.totalorder %s1601_s20, %s1597_s19  ;;  %p32_p1 = scmp.eq.s32.totalorder %s31_s26, 0 }
  0x10   : > { %p42_p2 = scmp.eq.s32.totalorder %s1605_s21, 0  ;;  %p47_p3 = scmp.ne.s32.totalorder %s1597_s19, %s1593_s18 }
  0x11   : > { %p48_p4 = scmp.eq.s32.totalorder %s1666_s22, 0  ;;  %p175_p7 = scmp.eq.s32.totalorder %s1666_s22, 2 }
  0x12   : > { %s1682_s27 = scalar_select %p32_p1, %s1601_s20, %s34_s25  }
  0x13   : > { %p43_p5 = por %p42_p2, %p41_p0  ;;  %p1684_p6 = por %p48_p4, %p47_p3 }
  0x14   : > { %2516 = sst [smem:[#allocation16_spill]] %s1682_s27  ;;  %p181_p8 = scmp.eq.s32.totalorder %s1169_s23, 2 }
  0x15   : > { %s2517_s28 = scalar_select %p1684_p6, 1, 0 }
  0x16   : > { %p1245_p9 = scmp.lt.s32.totalorder %s1605_s21, 3  ;;  %p1690_p10 = por %p175_p7, %p41_p0 }
  0x17   : > { %p1694_p11 = por %p181_p8, %p47_p3  ;;  %s1699_s6 = sand.u32 1, %s1601_s20  }
  0x18   : > { %s2518_s29 = scalar_select %p1690_p10, 1, 0 }
  0x19   : > { %s2519_s30 = scalar_select %p1694_p11, 1, 0 }
  0x1a   : > { %s1702_s7 = sshll.u32 %s1605_s21, 9  ;;  %s1705_s8 = sshll.u32 %s1699_s6, 5 }
  0x1b   : > { %p1707_p12 = pnand %p1245_p9, %p43_p5  ;;  %s223_s10 = sand.u32 1, %s1605_s21  }
  0x1c   : > { %s2521_s1 = sld [smem:[#allocation32_spill]]  ;;  %s227_s14 = scalar_lea.vmem [#allocation5], %s1705_s8 }
  0x1d   : > { %s235_s15 = sshll.u32 %s227_s14, 4  ;;  %s1722_s16 = scalar_lea.sflag [#allocation6], %s223_s10  ;;  %s1719_s15 = int_to_ptr.vmem [resolvable:$true] %s235_s15 }
  0x1e   : > { %p1728_p1 = pneg %p1707_p12 }
  0x22   : > { %s1716_s13 = scalar_lea.hbm %s2521_s1, %s1702_s7  ;;  %s1416_s11 = scalar_lea.hbm %s2521_s1, 1536 }
  0x23   : > { %s1411_s17 = scalar_lea.hbm %s1716_s13, 512  ;;  %p1417_p4 = scmp.lt.u32.totalorder %s1716_s13, %s2521_s1 }
  0x24   : > { %p1412_p0 = scmp.ne.s32.totalorder %s1716_s13, %s1411_s17  ;;  %p1418_p5 = scmp.lt.u32.totalorder %s1416_s11, %s1411_s17 }
  0x25   : > { %p1420_p8 = scmp.lt.u32.totalorder %s1411_s17, %s1716_s13 }
  0x26   : > { %p1414_p2 = pnand %p1728_p1, %p1412_p0  ;;  %p1419_p7 = por %p1418_p5, %p1417_p4 }
  0x28   : > { %p1415_p3 = pneg %p1414_p2  ;;  %p1421_p9 = por %p1420_p8, %p1419_p7 }
  0x2a   : > { %p1422_p13 = pnand %p1421_p9, %p1415_p3 }
  0x2c   : > { %1425 = shalt.err (!%p1422_p13)
}
  0x2d   : > { %s1426_s10 = scalar_lea.vmem %s1719_s15, 512  ;;  %s1607_s25 = smov [#allocation5]  }
  0x2e   : > { %p1427_p0 = scmp.ne.s32.totalorder %s1719_s15, %s1426_s10  ;;  %s1431_s26 = sshll.u32 %s1607_s25, 4  ;;  %s1432_s26 = int_to_ptr.vmem [resolvable:$false] %s1431_s26 }
  0x2f   : > { %s1433_s12 = scalar_lea.vmem %s1432_s26, 1024  ;;  %p1434_p10 = scmp.lt.s32.totalorder %s1719_s15, %s1432_s26 }
  0x30   : > { %p1429_p2 = pnand %p1427_p0, %p1728_p1  ;;  %p1435_p6 = scmp.lt.s32.totalorder %s1433_s12, %s1426_s10 }
  0x32   : > { %p1430_p11 = pneg %p1429_p2  ;;  %p1436_p4 = por %p1435_p6, %p1434_p10 }
  0x34   : > { %p1437_p5 = pnand %p1436_p4, %p1430_p11 }
  0x36   : > { %1440 = shalt.err (!%p1437_p5)
}
  0x37   : > { %s2492_s17 = smov 256   ;;  %s2494_s11 = smov 16  }
  0x38   : > { %1234 = dma.hbm_to_vmem [thread:$0]  (!%p1707_p12), %s1716_s13, 512, %s1719_s15, %s1722_s16, %s2492_s17, %s2492_s17, %s2494_s11  }
  0x39   : > { %p296_p6 = scmp.lt.s32.totalorder %s1605_s21, 4  ;;  %s2523_s0 = sld [smem:[#allocation31_spill]] }
  0x3a   : > { %p2524_p10 = scmp.ge.s32.totalorder %s1605_s21, 1  ;;  %s205_s12 = scalar_lea.vmem [#allocation2], %s1705_s8 }
  0x3b   : > { %s213_s1 = sshll.u32 %s205_s12, 4  ;;  %s202_s13 = scalar_lea.sflag [#allocation3], %s1699_s6  ;;  %s1769_s1 = int_to_ptr.vmem [resolvable:$true] %s213_s1 }
  0x3c   : > { %p1764_p11 = pnand %p2524_p10, %p296_p6 }
  0x3e   : > { %s2525_s26 = scalar_select %p1764_p11, 1, 0 }
  0x3f   : > { %s1760_s25 = scalar_lea.hbm %s2523_s0, %s1702_s7  ;;  %s1446_s17 = scalar_lea.hbm %s2523_s0, 1536 }
  0x40   : > { %s1441_s15 = scalar_lea.hbm %s1760_s25, 512  ;;  %p1447_p8 = scmp.lt.u32.totalorder %s1760_s25, %s2523_s0 }
  0x41   : > { %p1442_p13 = scmp.ne.s32.totalorder %s1760_s25, %s1441_s15  ;;  %p1448_p9 = scmp.lt.u32.totalorder %s1446_s17, %s1441_s15 }
  0x42   : > { %p1450_p2 = scmp.lt.u32.totalorder %s1441_s15, %s1760_s25 }
  0x43   : > { %p1444_p3 = pnand %p1442_p13, %p1728_p1  ;;  %p1449_p0 = por %p1448_p9, %p1447_p8 }
  0x45   : > { %p1445_p7 = pneg %p1444_p3  ;;  %p1451_p4 = por %p1450_p2, %p1449_p0 }
  0x47   : > { %p1452_p5 = pnand %p1451_p4, %p1445_p7 }
  0x49   : > { %1455 = shalt.err (!%p1452_p5)
}
  0x4a   : > { %s1456_s12 = scalar_lea.vmem %s1769_s1, 512  ;;  %s1610_s14 = smov [#allocation2]  }
  0x4b   : > { %p1457_p6 = scmp.ne.s32.totalorder %s1769_s1, %s1456_s12  ;;  %s1461_s10 = sshll.u32 %s1610_s14, 4  ;;  %s1462_s10 = int_to_ptr.vmem [resolvable:$false] %s1461_s10 }
  0x4c   : > { %s1463_s27 = scalar_lea.vmem %s1462_s10, 1024  ;;  %p1464_p3 = scmp.lt.s32.totalorder %s1769_s1, %s1462_s10 }
  0x4d   : > { %p1459_p10 = pnand %p1457_p6, %p1728_p1  ;;  %p1465_p11 = scmp.lt.s32.totalorder %s1463_s27, %s1456_s12 }
  0x4f   : > { %p1460_p13 = pneg %p1459_p10  ;;  %p1466_p8 = por %p1465_p11, %p1464_p3 }
  0x51   : > { %p1467_p9 = pnand %p1466_p8, %p1460_p13 }
  0x53   : > { %1470 = shalt.err (!%p1467_p9)
}
  0x54   : > { %s2526_s17 = smov 16   ;;  %s2527_s11 = smov 256  }
  0x55   : > { %1231 = dma.hbm_to_vmem [thread:$0]  (!%p1707_p12), %s1760_s25, 512, %s1769_s1, %s202_s13, %s2527_s11, %s2527_s11, %s2526_s17  }
  0x56   : > { %s1802_s12 = scalar_lea.hbm %s2486_s2, %s1702_s7  ;;  %s249_s10 = scalar_lea.vmem [#allocation7], %s1705_s8 }
  0x57   : > { %s257_s27 = sshll.u32 %s249_s10, 4  ;;  %s1471_s0 = scalar_lea.hbm %s1802_s12, 512  ;;  %s1805_s27 = int_to_ptr.vmem [resolvable:$true] %s257_s27 }
  0x58   : > { %p1472_p11 = scmp.ne.s32.totalorder %s1802_s12, %s1471_s0  ;;  %s1476_s25 = scalar_lea.hbm %s2486_s2, 1536 }
  0x59   : > { %p1477_p2 = scmp.lt.u32.totalorder %s1802_s12, %s2486_s2  ;;  %p1478_p4 = scmp.lt.u32.totalorder %s1476_s25, %s1471_s0 }
  0x5a   : > { %p1474_p7 = pnand %p1472_p11, %p1728_p1  ;;  %p1480_p6 = scmp.lt.u32.totalorder %s1471_s0, %s1802_s12 }
  0x5b   : > { %p1479_p5 = por %p1478_p4, %p1477_p2 }
  0x5c   : > { %p1475_p0 = pneg %p1474_p7 }
  0x5d   : > { %p1481_p10 = por %p1480_p6, %p1479_p5 }
  0x5f   : > { %p1482_p13 = pnand %p1481_p10, %p1475_p0 }
  0x61   : > { %1485 = shalt.err (!%p1482_p13)
}
  0x62   : > { %s1486_s14 = scalar_lea.vmem %s1805_s27, 512  ;;  %s1611_s20 = smov [#allocation7]  }
  0x63   : > { %p1487_p3 = scmp.ne.s32.totalorder %s1805_s27, %s1486_s14  ;;  %s1491_s10 = sshll.u32 %s1611_s20, 4  ;;  %s1492_s10 = int_to_ptr.vmem [resolvable:$false] %s1491_s10 }
  0x64   : > { %s1493_s1 = scalar_lea.vmem %s1492_s10, 1024  ;;  %p1494_p11 = scmp.lt.s32.totalorder %s1805_s27, %s1492_s10 }
  0x65   : > { %p1489_p8 = pnand %p1487_p3, %p1728_p1  ;;  %p1495_p7 = scmp.lt.s32.totalorder %s1493_s1, %s1486_s14 }
  0x67   : > { %p1490_p9 = pneg %p1489_p8  ;;  %p1496_p2 = por %p1495_p7, %p1494_p11 }
  0x69   : > { %p1497_p4 = pnand %p1496_p2, %p1490_p9 }
  0x6b   : > { %1500 = shalt.err (!%p1497_p4)
}
  0x6c   : > { %1237 = dma.hbm_to_vmem [thread:$0]  (!%p1707_p12), %s1802_s12, 512, %s1805_s27, %s1722_s16, %s2527_s11, %s2527_s11, %s2526_s17  }
  0x6d   : > { %s1836_s13 = scalar_lea.hbm %s2487_s3, %s1702_s7  ;;  %s271_s15 = scalar_lea.vmem [#allocation8], %s1705_s8 }
  0x6e   : > { %s279_s14 = sshll.u32 %s271_s15, 4  ;;  %s268_s20 = scalar_lea.sflag [#allocation9], %s1699_s6  ;;  %s1839_s14 = int_to_ptr.vmem [resolvable:$true] %s279_s14 }
  0x6f   : > { %s1501_s10 = scalar_lea.hbm %s1836_s13, 512  ;;  %s1506_s27 = scalar_lea.hbm %s2487_s3, 1536 }
  0x70   : > { %p1502_p0 = scmp.ne.s32.totalorder %s1836_s13, %s1501_s10  ;;  %p1507_p10 = scmp.lt.u32.totalorder %s1836_s13, %s2487_s3 }
  0x71   : > { %p1508_p13 = scmp.lt.u32.totalorder %s1506_s27, %s1501_s10  ;;  %p1510_p8 = scmp.lt.u32.totalorder %s1501_s10, %s1836_s13 }
  0x72   : > { %p1504_p5 = pnand %p1502_p0, %p1728_p1 }
  0x73   : > { %p1509_p3 = por %p1508_p13, %p1507_p10 }
  0x74   : > { %p1505_p6 = pneg %p1504_p5 }
  0x75   : > { %p1511_p9 = por %p1510_p8, %p1509_p3 }
  0x77   : > { %p1512_p11 = pnand %p1511_p9, %p1505_p6 }
  0x79   : > { %1515 = shalt.err (!%p1512_p11)
}
  0x7a   : > { %s1516_s8 = scalar_lea.vmem %s1839_s14, 512  ;;  %s1612_s0 = smov [#allocation8]  }
  0x7b   : > { %p1517_p7 = scmp.ne.s32.totalorder %s1839_s14, %s1516_s8  ;;  %s1521_s25 = sshll.u32 %s1612_s0, 4  ;;  %s1522_s25 = int_to_ptr.vmem [resolvable:$false] %s1521_s25 }
  0x7c   : > { %s1523_s15 = scalar_lea.vmem %s1522_s25, 1024  ;;  %p1524_p0 = scmp.lt.s32.totalorder %s1839_s14, %s1522_s25 }
  0x7d   : > { %p1519_p2 = pnand %p1517_p7, %p1728_p1  ;;  %p1525_p5 = scmp.lt.s32.totalorder %s1523_s15, %s1516_s8 }
  0x7f   : > { %p1520_p4 = pneg %p1519_p2  ;;  %p1526_p10 = por %p1525_p5, %p1524_p0 }
  0x81   : > { %p1527_p13 = pnand %p1526_p10, %p1520_p4 }
  0x83   : > { %1530 = shalt.err (!%p1527_p13)
}
  0x84   : > { %1240 = dma.hbm_to_vmem [thread:$0]  (!%p1707_p12), %s1836_s13, 512, %s1839_s14, %s268_s20, %s2527_s11, %s2527_s11, %s2526_s17  }
  0x85   : > { %p2528_p1 = scmp.ne.s32.totalorder %s2525_s26, 0 }
  0x87   : > { %300 = sbr.rel (%p2528_p1) target bundleno = 382 (0x17e), region = 40 }
  0x8e   : > { %s1871_s23 = sand.u32 1, %s1597_s19   ;;  %p2529_p6 = scmp.ne.s32.totalorder %s2517_s28, 0 }
  0x8f   : > { %s1189_s10 = sshll.u32 %s1871_s23, 5  ;;  %s303_s16 = scalar_lea.sflag [#allocation3], %s1871_s23 }
  0x90   : > { %s1875_s9 = scalar_lea.vmem [#allocation2], %s1189_s10 }
  0x91   : > { %1576 = dma.done.wait (%p2529_p6), %s303_s16, 512  }
  0x92   : > { %1578 = vsyncadd (%p2529_p6), %s303_s16, 4294966784  ;;  %s311_s6 = sand.u32 1, %s1666_s22   ;;  %s1882_s17 = scalar_lea.vmem [#allocation5], %s1189_s10 }
  0x93   : > { %s312_s26 = scalar_lea.sflag [#allocation6], %s311_s6 }
  0x94   : > { %1580 = dma.done.wait (%p2529_p6), %s312_s26, 1024  }
  0x95   : > { %1582 = vsyncadd (%p2529_p6), %s312_s26, 4294966272  ;;  %s1888_s11 = scalar_lea.vmem [#allocation7], %s1189_s10  ;;  %s330_s13 = scalar_lea.sflag [#allocation9], %s1871_s23 }
  0x96   : > { %s1891_s14 = scalar_lea.vmem [#allocation8], %s1189_s10 }
  0x97   : > { %1584 = dma.done.wait (%p2529_p6), %s330_s13, 512  }
  0x98   : > { %1586 = vsyncadd (%p2529_p6), %s330_s13, 4294966784  ;;  %s1193_s20 = sshll.u32 %s1666_s22, 1  ;;  %v1613_v0 = vmov 0   ;;  %v1902_v3 = vld [vmem:[%s1888_s11] sm:$0xff]  ;;  %v1905_v4 = vld [vmem:[%s1888_s11 + $0x8] sm:$0xff]  ;;  %s1207_s28 = sshll.u32 %s1666_s22, 4 }
  0x99   : > { %1282 = vset.pattern.permute.xlu0 %v1613_v0  ;;  %p384_p12 = scmp.lt.s32.totalorder %s1193_s20, 5  ;;  %2530 = vst [vmem:[#allocation17_spill] sm:$0xff] %v1905_v4  ;;  %v1908_v5 = vld [vmem:[%s1888_s11 + $0x10] sm:$0xff]  ;;  %v1911_v6 = vadd.f32 1e-10, %v1902_v3  ;;  %v1914_v7 = vld [vmem:[%s1888_s11 + $0x18] sm:$0xff]  ;;  %s2441_s10 = scalar_lea.hbm %s2489_s5, %s1207_s28 }
  0x9a   : > { %2531 = vst [vmem:[#allocation18_spill] sm:$0xff] %v1908_v5  ;;  %2532 = vst [vmem:[#allocation19_spill] sm:$0xff] %v1914_v7  ;;  %v1917_v8 = vadd.f32 1e-10, %v1905_v4  ;;  %v1920_v9 = vadd.f32 1e-10, %v1908_v5 }
  0x9b   : > { %s2575_s20 = smov (!%p384_p12, %s1193_s20), 5  ;;  %v1923_v10 = vadd.f32 1e-10, %v1914_v7  ;;  %v465_v11 = vadd.f32 1.0, %v1911_v6  ;;  %v1934_v33 = vld [vmem:[%s1875_s9] sm:$0xff]  ;;  %v1937_v34 = vld [vmem:[%s1875_s9 + $0x8] sm:$0xff]  ;;  %1283 = vlog2.f32 %v1911_v6 }
  0x9c   : > { %s1194_s12 = sshll.u32 %s2575_s20, 3  ;;  %v466_v12 = vadd.f32 1.0, %v1917_v8  ;;  %v467_v13 = vadd.f32 1.0, %v1920_v9  ;;  %2533 = vst [vmem:[#allocation20_spill] sm:$0xff] %v1934_v33  ;;  %2534 = vst [vmem:[#allocation21_spill] sm:$0xff] %v1937_v34  ;;  %v1940_v37 = vld [vmem:[%s1875_s9 + $0x10] sm:$0xff]  ;;  %1285 = vlog2.f32 %v1917_v8 }
  0x9d   : > { %s387_s1 = scalar_lea.vmem %s2488_s4, %s1194_s12  ;;  %v468_v14 = vadd.f32 1.0, %v1923_v10  ;;  %v469_v15 = vmul.f32 %v465_v11, %v1911_v6  ;;  %v473_v16 = vadd.f32 1.0, %v465_v11  ;;  %2535 = vst [vmem:[#allocation22_spill] sm:$0xff] %v1940_v37  ;;  %v1943_v44 = vadd.f32 1.0, %v1934_v33  ;;  %v1949_v46 = vld [vmem:[%s1875_s9 + $0x18] sm:$0xff]  ;;  %s378_s8 = scalar_lea.vmem [#allocation10], %s1871_s23 }
  0x9e   : > { %v397_v1 = vld [vmem:[%s387_s1] sm:$0xff]  ;;  %v398_v2 = vld [vmem:[%s387_s1 + $0x8] sm:$0xff]  ;;  %v470_v17 = vmul.f32 %v466_v12, %v1917_v8  ;;  %v474_v18 = vadd.f32 1.0, %v466_v12  ;;  %v471_v19 = vmul.f32 %v467_v13, %v1920_v9  ;;  %v475_v20 = vadd.f32 1.0, %v467_v13  ;;  %2536 = vst [vmem:[#allocation23_spill] sm:$0xff] %v1949_v46  ;;  %s1025_s0 = sshll.u32 %s378_s8, 4  ;;  %s2443_s0 = int_to_ptr.vmem [resolvable:$true] %s1025_s0 }
  0x9f   : > { %401 = vperm.xlu0 %1282, %v397_v1   ;;  %v472_v21 = vmul.f32 %v468_v14, %v1923_v10  ;;  %v476_v22 = vadd.f32 1.0, %v468_v14  ;;  %v477_v23 = vmul.f32 %v473_v16, %v469_v15  ;;  %v481_v24 = vadd.f32 1.0, %v473_v16  ;;  %s1013_s16 = scalar_lea.sflag [#allocation4], %s1871_s23  ;;  %p2567_p8 = scmp.ne.s32.totalorder %s2518_s29, 0 }
  0xa0   : > { %v478_v25 = vmul.f32 %v474_v18, %v470_v17  ;;  %v482_v26 = vadd.f32 1.0, %v474_v18  ;;  %v479_v27 = vmul.f32 %v475_v20, %v471_v19  ;;  %v483_v28 = vadd.f32 1.0, %v475_v20  ;;  %s1614_s22 = smov [#allocation10]  }
  0xa1   : > { %v480_v29 = vmul.f32 %v476_v22, %v472_v21  ;;  %v484_v30 = vadd.f32 1.0, %v476_v22  ;;  %v485_v31 = vmul.f32 %v481_v24, %v477_v23  ;;  %v489_v32 = vadd.f32 1.0, %v481_v24  ;;  %s1535_s6 = sshll.u32 %s1614_s22, 4  ;;  %s1536_s6 = int_to_ptr.vmem [resolvable:$false] %s1535_s6 }
  0xa2   : > { %v486_v35 = vmul.f32 %v482_v26, %v478_v25  ;;  %v490_v36 = vadd.f32 1.0, %v482_v26  ;;  %v487_v38 = vmul.f32 %v483_v28, %v479_v27  ;;  %v491_v39 = vadd.f32 1.0, %v483_v28  ;;  %s1537_s26 = scalar_lea.vmem %s1536_s6, 32  ;;  %p1538_p7 = scmp.lt.s32.totalorder %s2443_s0, %s1536_s6 }
  0xa3   : > { %406 = vperm.xlu0 %1282, %v398_v2   ;;  %v488_v40 = vmul.f32 %v484_v30, %v480_v29  ;;  %v492_v41 = vadd.f32 1.0, %v484_v30  ;;  %v493_v42 = vmul.f32 %v489_v32, %v485_v31  ;;  %v497_v43 = vadd.f32 1.0, %v489_v32 }
  0xa4   : > { %v1946_v45 = vadd.f32 1.0, %v1937_v34  ;;  %v494_v47 = vmul.f32 %v490_v36, %v486_v35  ;;  %v498_v48 = vadd.f32 1.0, %v490_v36  ;;  %v533_v49 = vadd.f32 8.0, %v1911_v6 }
  0xa5   : > { %v1953_v50 = vadd.f32 1.0, %v1940_v37  ;;  %vm461_vm0 = vcmp.lt.f32.partialorder %v1911_v6, 8.0  ;;  %v495_v51 = vmul.f32 %v491_v39, %v487_v38  ;;  %v499_v52 = vadd.f32 1.0, %v491_v39  ;;  %v1284_v23 = vpop.eup %1283 }
  0xa6   : > { %v496_v53 = vmul.f32 %v492_v41, %v488_v40  ;;  %v500_v54 = vadd.f32 1.0, %v492_v41  ;;  %v501_v55 = vmul.f32 %v497_v43, %v493_v42  ;;  %v505_v56 = vadd.f32 1.0, %v497_v43  ;;  %v1286_v31 = vpop.eup %1285 }
  0xa7   : > { %vm462_vm1 = vcmp.lt.f32.partialorder %v1917_v8, 8.0  ;;  %v534_v57 = vadd.f32 8.0, %v1917_v8  ;;  %v1961_v58 = vadd.f32 1.0, %v1949_v46  ;;  %v502_v59 = vmul.f32 %v498_v48, %v494_v47 }
  0xa8   : > { %v506_v60 = vadd.f32 1.0, %v498_v48  ;;  %v535_v61 = vadd.f32 8.0, %v1920_v9  ;;  %v1967_v62 = vsel %vm461_vm0, %v533_v49, %v1911_v6  ;;  %1287 = vlog2.f32 %v1920_v9 }
  0xa9   : > { %vm463_vm2 = vcmp.lt.f32.partialorder %v1920_v9, 8.0  ;;  %vm464_vm3 = vcmp.lt.f32.partialorder %v1923_v10, 8.0  ;;  %v503_v63 = vmul.f32 %v499_v52, %v495_v51  ;;  %v504_v0 = vmul.f32 %v500_v54, %v496_v53 }
  0xaa   : > { %v509_v1 = vmul.f32 %v505_v56, %v501_v55  ;;  %v513_v2 = vadd.f32 1.0, %v505_v56  ;;  %v536_v11 = vadd.f32 8.0, %v1923_v10  ;;  %v507_v12 = vadd.f32 1.0, %v499_v52 }
  0xab   : > { %v508_v13 = vadd.f32 1.0, %v500_v54  ;;  %v1976_v14 = vsel %vm462_vm1, %v534_v57, %v1917_v8  ;;  %1289 = vrcp.f32 %v1967_v62  ;;  %v510_v15 = vmul.f32 %v506_v60, %v502_v59 }
  0xac   : > { %v514_v16 = vadd.f32 1.0, %v506_v60  ;;  %v1982_v17 = vsel %vm463_vm2, %v535_v61, %v1920_v9  ;;  %v609_v18 = vadd.f32 1.0, %v1943_v44  ;;  %v610_v19 = vadd.f32 1.0, %v1946_v45 }
  0xad   : > { %v517_v20 = vmul.f32 %v513_v2, %v509_v1  ;;  %v1989_v21 = vsel %vm464_vm3, %v536_v11, %v1923_v10  ;;  %1291 = vrcp.f32 %v1976_v14  ;;  %v611_v22 = vadd.f32 1.0, %v1953_v50 }
  0xae   : > { %v511_v24 = vmul.f32 %v507_v12, %v503_v63  ;;  %v512_v25 = vmul.f32 %v508_v13, %v504_v0  ;;  %1293 = vrcp.f32 %v1982_v17  ;;  %v612_v26 = vadd.f32 1.0, %v1961_v58 }
  0xaf   : > { %v515_v27 = vadd.f32 1.0, %v507_v12  ;;  %v516_v28 = vadd.f32 1.0, %v508_v13  ;;  %v518_v29 = vmul.f32 %v514_v16, %v510_v15  ;;  %v613_v30 = vmul.f32 %v609_v18, %v1943_v44 }
  0xb0   : > { %1295 = vrcp.f32 %v1989_v21  ;;  %v614_v32 = vmul.f32 %v610_v19, %v1946_v45  ;;  %v617_v35 = vadd.f32 1.0, %v609_v18  ;;  %v618_v36 = vadd.f32 1.0, %v610_v19 }
  0xb1   : > { %v521_v38 = vsel %vm461_vm0, %v517_v20, 1.0  ;;  %v615_v39 = vmul.f32 %v611_v22, %v1953_v50  ;;  %v619_v40 = vadd.f32 1.0, %v611_v22  ;;  %1297 = vlog2.f32 %v1923_v10 }
  0xb2   : > { %v1288_v41 = vpop.eup %1287  ;;  %v616_v42 = vmul.f32 %v612_v26, %v1961_v58  ;;  %v620_v43 = vadd.f32 1.0, %v612_v26  ;;  %v2005_v47 = vadd.f32 %v1911_v6, %v1934_v33  ;;  %v519_v48 = vmul.f32 %v515_v27, %v511_v24 }
  0xb3   : > { %v520_v49 = vmul.f32 %v516_v28, %v512_v25  ;;  %v522_v51 = vsel %vm462_vm1, %v518_v29, 1.0  ;;  %1299 = vlog2.f32 %v1967_v62  ;;  %v621_v53 = vmul.f32 %v617_v35, %v613_v30 }
  0xb4   : > { %1301 = vlog2.f32 %v521_v38  ;;  %v622_v54 = vmul.f32 %v618_v36, %v614_v32  ;;  %v625_v55 = vadd.f32 1.0, %v617_v35  ;;  %v623_v56 = vmul.f32 %v619_v40, %v615_v39 }
  0xb5   : > { %v2010_v52 = vpop.eup %1289  ;;  %1303 = vlog2.f32 %v1976_v14  ;;  %v626_v57 = vadd.f32 1.0, %v618_v36  ;;  %v627_v59 = vadd.f32 1.0, %v619_v40  ;;  %v2013_v6 = vmul.f32 0.6931472, %v1284_v23 }
  0xb6   : > { %1305 = vlog2.f32 %v522_v51  ;;  %v624_v60 = vmul.f32 %v620_v43, %v616_v42  ;;  %v628_v61 = vadd.f32 1.0, %v620_v43  ;;  %v2017_v0 = vmul.f32 0.6931472, %v1286_v31 }
  0xb7   : > { %2537 = vst [vmem:[#allocation24_spill] sm:$0xff] %v2013_v6  ;;  %v2015_v63 = vpop.eup %1291  ;;  %v2019_v1 = vmul.f32 0.6931472, %v1288_v41  ;;  %v545_v2 = vmul.f32 %v2010_v52, %v2010_v52  ;;  %1307 = vlog2.f32 %v1982_v17  ;;  %v523_v12 = vsel %vm463_vm2, %v519_v48, 1.0 }
  0xb8   : > { %2538 = vst [vmem:[#allocation25_spill] sm:$0xff] %v2017_v0  ;;  %v2024_v11 = vpop.eup %1293  ;;  %v524_v13 = vsel %vm464_vm3, %v520_v49, 1.0  ;;  %1309 = vlog2.f32 %v1989_v21  ;;  %v629_v15 = vmul.f32 %v625_v55, %v621_v53  ;;  %vm605_vm4 = vcmp.lt.f32.partialorder %v1943_v44, 8.0 }
  0xb9   : > { %2539 = vst [vmem:[#allocation26_spill] sm:$0xff] %v2019_v1  ;;  %v630_v16 = vmul.f32 %v626_v57, %v622_v54  ;;  %v631_v18 = vmul.f32 %v627_v59, %v623_v56  ;;  %v633_v19 = vadd.f32 1.0, %v625_v55  ;;  %v634_v20 = vadd.f32 1.0, %v626_v57 }
  0xba   : > { %v2032_v22 = vpop.eup %1295  ;;  %v546_v23 = vmul.f32 %v2015_v63, %v2015_v63  ;;  %v632_v24 = vmul.f32 %v628_v61, %v624_v60  ;;  %v635_v25 = vadd.f32 1.0, %v627_v59  ;;  %v636_v26 = vadd.f32 1.0, %v628_v61 }
  0xbb   : > { %v547_v27 = vmul.f32 %v2024_v11, %v2024_v11  ;;  %v549_v28 = vmul.f32 0.0007936508, %v545_v2  ;;  %v1195_v29 = vadd.f32 -0.5, %v1967_v62  ;;  %v1196_v30 = vadd.f32 -0.5, %v1976_v14  ;;  %v2041_v31 = vpop.eup %1297 }
  0xbc   : > { %vm606_vm5 = vcmp.lt.f32.partialorder %v1946_v45, 8.0  ;;  %2540 = vst [vmem:[#allocation27_spill] sm:$0xff] %v2041_v31  ;;  %1311 = vlog2.f32 %v523_v12  ;;  %v1197_v32 = vadd.f32 -0.5, %v1982_v17  ;;  %v1198_v35 = vadd.f32 -0.5, %v1989_v21 }
  0xbd   : > { %vm607_vm6 = vcmp.lt.f32.partialorder %v1953_v50, 8.0  ;;  %v1300_v36 = vpop.eup %1299  ;;  %v548_v38 = vmul.f32 %v2032_v22, %v2032_v22  ;;  %v637_v39 = vmul.f32 %v633_v19, %v629_v15  ;;  %v638_v40 = vmul.f32 %v634_v20, %v630_v16 }
  0xbe   : > { %v641_v41 = vadd.f32 1.0, %v633_v19  ;;  %v2048_v42 = vpop.eup %1301  ;;  %v550_v43 = vmul.f32 0.0007936508, %v546_v23  ;;  %v639_v48 = vmul.f32 %v635_v25, %v631_v18  ;;  %v640_v49 = vmul.f32 %v636_v26, %v632_v24 }
  0xbf   : > { %v642_v51 = vadd.f32 1.0, %v634_v20  ;;  %v1304_v53 = vpop.eup %1303  ;;  %v551_v54 = vmul.f32 0.0007936508, %v547_v27  ;;  %v553_v55 = vadd.f32 -0.0027777778, %v549_v28  ;;  %v643_v56 = vadd.f32 1.0, %v635_v25 }
  0xc0   : > { %v644_v57 = vadd.f32 1.0, %v636_v26  ;;  %v1306_v59 = vpop.eup %1305  ;;  %1313 = vlog2.f32 %v524_v13  ;;  %v574_v60 = vmul.f32 0.6931472, %v1300_v36  ;;  %vm608_vm7 = vcmp.lt.f32.partialorder %v1961_v58, 8.0 }
  0xc1   : > { %v677_v61 = vadd.f32 8.0, %v1943_v44  ;;  %v1308_v12 = vpop.eup %1307  ;;  %v552_v15 = vmul.f32 0.0007936508, %v548_v38  ;;  %v645_v16 = vmul.f32 %v641_v41, %v637_v39  ;;  %v649_v19 = vadd.f32 1.0, %v641_v41 }
  0xc2   : > { %v678_v18 = vadd.f32 8.0, %v1946_v45  ;;  %v1310_v24 = vpop.eup %1309  ;;  %v554_v20 = vadd.f32 -0.0027777778, %v550_v43  ;;  %v576_v33 = vmul.f32 0.6931472, %v1304_v53  ;;  %v646_v1 = vmul.f32 %v642_v51, %v638_v40 }
  0xc3   : > { %v679_v25 = vadd.f32 8.0, %v1953_v50  ;;  %v555_v26 = vadd.f32 -0.0027777778, %v551_v54  ;;  %v557_v28 = vmul.f32 %v553_v55, %v545_v2  ;;  %v647_v13 = vmul.f32 %v643_v56, %v639_v48 }
  0xc4   : > { %v648_v36 = vmul.f32 %v644_v57, %v640_v49  ;;  %v578_v0 = vmul.f32 0.6931472, %v1308_v12  ;;  %v581_v6 = vmul.f32 %v1195_v29, %v574_v60  ;;  %v650_v31 = vadd.f32 1.0, %v642_v51 }
  0xc5   : > { %v2057_v39 = vsel %vm605_vm4, %v677_v61, %v1943_v44  ;;  %v556_v41 = vadd.f32 -0.0027777778, %v552_v15  ;;  %v580_v7 = vmul.f32 0.6931472, %v1310_v24  ;;  %v653_v5 = vmul.f32 %v649_v19, %v645_v16 }
  0xc6   : > { %v657_v43 = vadd.f32 1.0, %v649_v19  ;;  %v1312_v53 = vpop.eup %1311  ;;  %v558_v40 = vmul.f32 %v554_v20, %v546_v23  ;;  %v582_v4 = vmul.f32 %v1196_v30, %v576_v33  ;;  %v680_v54 = vadd.f32 8.0, %v1961_v58 }
  0xc7   : > { %v2063_v2 = vsel %vm606_vm5, %v678_v18, %v1946_v45  ;;  %v559_v29 = vmul.f32 %v555_v26, %v547_v27  ;;  %v561_v48 = vadd.f32 0.083333336, %v557_v28  ;;  %v2068_v49 = vsel %vm607_vm6, %v679_v25, %v1953_v50 }
  0xc8   : > { %1315 = vrcp.f32 %v2057_v39  ;;  %v583_v51 = vmul.f32 %v1197_v32, %v578_v0  ;;  %v585_v23 = vsub.f32 %v581_v6, %v1967_v62  ;;  %v651_v33 = vadd.f32 1.0, %v643_v56 }
  0xc9   : > { %v654_v30 = vmul.f32 %v650_v31, %v646_v1  ;;  %v560_v55 = vmul.f32 %v556_v41, %v548_v38  ;;  %v584_v60 = vmul.f32 %v1198_v35, %v580_v7  ;;  %v661_v61 = vmul.f32 %v657_v43, %v653_v5 }
  0xca   : > { %1317 = vrcp.f32 %v2063_v2  ;;  %v1314_v12 = vpop.eup %1313  ;;  %v562_v27 = vadd.f32 0.083333336, %v558_v40  ;;  %v652_v15 = vadd.f32 1.0, %v644_v57  ;;  %v2076_v16 = vsel %vm608_vm7, %v680_v54, %v1961_v58 }
  0xcb   : > { %1319 = vrcp.f32 %v2068_v49  ;;  %v563_v0 = vadd.f32 0.083333336, %v559_v29  ;;  %v565_v62 = vmul.f32 %v2010_v52, %v561_v48  ;;  %v586_v6 = vsub.f32 %v582_v4, %v1976_v14 }
  0xcc   : > { %v658_v1 = vadd.f32 1.0, %v650_v31  ;;  %v587_v5 = vsub.f32 %v583_v51, %v1982_v17  ;;  %v589_v7 = vadd.f32 0.9189385, %v585_v23  ;;  %v655_v32 = vmul.f32 %v651_v33, %v647_v13 }
  0xcd   : > { %v659_v35 = vadd.f32 1.0, %v651_v33  ;;  %v564_v38 = vadd.f32 0.083333336, %v560_v55  ;;  %v588_v56 = vsub.f32 %v584_v60, %v1989_v21  ;;  %v665_v57 = vsel %vm605_vm4, %v661_v61, 1.0 }
  0xce   : > { %1321 = vrcp.f32 %v2076_v16  ;;  %v2087_v19 = vmul.f32 0.6931472, %v2048_v42  ;;  %v2089_v52 = vmul.f32 0.6931472, %v1306_v59  ;;  %v656_v4 = vmul.f32 %v652_v15, %v648_v36 }
  0xcf   : > { %v660_v14 = vadd.f32 1.0, %v652_v15  ;;  %v566_v17 = vmul.f32 %v2015_v63, %v562_v27  ;;  %v590_v31 = vadd.f32 0.9189385, %v586_v6  ;;  %v662_v18 = vmul.f32 %v658_v1, %v654_v30 }
  0xd0   : > { %2541 = vst [vmem:[#allocation28_spill] sm:$0xff] %v2087_v19  ;;  %1323 = vlog2.f32 %v2057_v39  ;;  %v567_v21 = vmul.f32 %v2024_v11, %v563_v0  ;;  %v591_v24 = vadd.f32 0.9189385, %v587_v5  ;;  %v663_v44 = vmul.f32 %v659_v35, %v655_v32 }
  0xd1   : > { %1325 = vlog2.f32 %v665_v57  ;;  %v568_v42 = vmul.f32 %v2032_v22, %v564_v38  ;;  %v592_v25 = vadd.f32 0.9189385, %v588_v56  ;;  %v2097_v59 = vadd.f32 %v589_v7, %v565_v62 }
  0xd2   : > { %v2094_v20 = vpop.eup %1315  ;;  %1327 = vlog2.f32 %v2063_v2  ;;  %v2100_v26 = vmul.f32 0.6931472, %v1312_v53  ;;  %v2102_v63 = vmul.f32 0.6931472, %v1314_v12  ;;  %v664_v28 = vmul.f32 %v660_v14, %v656_v4 }
  0xd3   : > { %2542 = vst [vmem:[#allocation29_spill] sm:$0xff] %v2097_v59  ;;  %v2106_v11 = vadd.f32 %v1917_v8, %v1937_v34  ;;  %v2110_v36 = vadd.f32 %v590_v31, %v566_v17  ;;  %v666_v22 = vsel %vm606_vm5, %v662_v18, 1.0  ;;  %1329 = vlog2.f32 %v2068_v49 }
  0xd4   : > { %v2108_v13 = vpop.eup %1317  ;;  %v2117_v41 = vadd.f32 %v1920_v9, %v1940_v37  ;;  %v2121_v53 = vadd.f32 %v591_v24, %v567_v21  ;;  %v667_v8 = vsel %vm607_vm6, %v663_v44, 1.0  ;;  %v689_v40 = vmul.f32 %v2094_v20, %v2094_v20 }
  0xd5   : > { %v2119_v43 = vpop.eup %1319  ;;  %v2129_v45 = vadd.f32 %v1923_v10, %v1949_v46  ;;  %v2131_v54 = vadd.f32 %v592_v25, %v568_v42  ;;  %1331 = vlog2.f32 %v2076_v16  ;;  %v757_v29 = vadd.f32 1.0, %v2005_v47 }
  0xd6   : > { %v668_v50 = vsel %vm608_vm7, %v664_v28, 1.0  ;;  %1333 = vlog2.f32 %v666_v22  ;;  %v690_v48 = vmul.f32 %v2108_v13, %v2108_v13  ;;  %v758_v51 = vadd.f32 1.0, %v2106_v11 }
  0xd7   : > { %2543 = vst [vmem:[#allocation30_spill] sm:$0xff] %v2131_v54  ;;  %1335 = vlog2.f32 %v667_v8  ;;  %v691_v23 = vmul.f32 %v2119_v43, %v2119_v43  ;;  %v1199_v33 = vadd.f32 -0.5, %v2057_v39  ;;  %v759_v30 = vadd.f32 1.0, %v2117_v41 }
  0xd8   : > { %v2142_v10 = vpop.eup %1321  ;;  %v693_v55 = vmul.f32 0.0007936508, %v689_v40  ;;  %v1200_v58 = vadd.f32 -0.5, %v2063_v2  ;;  %v1201_v60 = vadd.f32 -0.5, %v2068_v49  ;;  %v760_v61 = vadd.f32 1.0, %v2129_v45 }
  0xd9   : > { %v2152_v27 = vadd.f32 -0.5, %v2076_v16  ;;  %v761_v15 = vmul.f32 %v757_v29, %v2005_v47  ;;  %v765_v0 = vadd.f32 1.0, %v757_v29  ;;  %v2156_v62 = vadd.f32 8.0, %v2005_v47 }
  0xda   : > { %v1324_v12 = vpop.eup %1323  ;;  %v692_v1 = vmul.f32 %v2142_v10, %v2142_v10  ;;  %v694_v5 = vmul.f32 0.0007936508, %v690_v48  ;;  %v762_v7 = vmul.f32 %v758_v51, %v2106_v11  ;;  %v2162_v32 = vadd.f32 8.0, %v2106_v11 }
  0xdb   : > { %v1326_v6 = vpop.eup %1325  ;;  %v695_v38 = vmul.f32 0.0007936508, %v691_v23  ;;  %v763_v56 = vmul.f32 %v759_v30, %v2117_v41  ;;  %v766_v57 = vadd.f32 1.0, %v758_v51  ;;  %v767_v4 = vadd.f32 1.0, %v759_v30 }
  0xdc   : > { %v1328_v35 = vpop.eup %1327  ;;  %v697_v14 = vadd.f32 -0.0027777778, %v693_v55  ;;  %v718_v17 = vmul.f32 0.6931472, %v1324_v12  ;;  %v764_v31 = vmul.f32 %v760_v61, %v2129_v45  ;;  %v768_v18 = vadd.f32 1.0, %v760_v61 }
  0xdd   : > { %v1330_v21 = vpop.eup %1329  ;;  %v2166_v24 = vmul.f32 0.6931472, %v1326_v6  ;;  %vm753_vm8 = vcmp.lt.f32.partialorder %v2005_v47, 8.0  ;;  %v769_v44 = vmul.f32 %v765_v0, %v761_v15  ;;  %v773_v42 = vadd.f32 1.0, %v765_v0 }
  0xde   : > { %v2170_v25 = vadd.f32 8.0, %v2117_v41  ;;  %1337 = vlog2.f32 %v668_v50  ;;  %v696_v28 = vmul.f32 0.0007936508, %v692_v1  ;;  %v698_v22 = vadd.f32 -0.0027777778, %v694_v5 }
  0xdf   : > { %v720_v8 = vmul.f32 0.6931472, %v1328_v35  ;;  %v1332_v29 = vpop.eup %1331  ;;  %v699_v51 = vadd.f32 -0.0027777778, %v695_v38  ;;  %v770_v30 = vmul.f32 %v766_v57, %v762_v7  ;;  %v771_v55 = vmul.f32 %v767_v4, %v763_v56 }
  0xe0   : > { %v774_v12 = vadd.f32 1.0, %v766_v57  ;;  %v1334_v61 = vpop.eup %1333  ;;  %v701_v9 = vmul.f32 %v697_v14, %v689_v40  ;;  %v722_v6 = vmul.f32 0.6931472, %v1330_v21  ;;  %v725_v46 = vmul.f32 %v1199_v33, %v718_v17 }
  0xe1   : > { %v775_v37 = vadd.f32 1.0, %v767_v4  ;;  %v1336_v34 = vpop.eup %1335  ;;  %vm754_vm9 = vcmp.lt.f32.partialorder %v2106_v11, 8.0  ;;  %v772_v15 = vmul.f32 %v768_v18, %v764_v31  ;;  %v776_v0 = vadd.f32 1.0, %v768_v18 }
  0xe2   : > { %v777_v19 = vmul.f32 %v773_v42, %v769_v44  ;;  %v781_v50 = vadd.f32 1.0, %v773_v42  ;;  %v700_v59 = vadd.f32 -0.0027777778, %v696_v28  ;;  %v702_v5 = vmul.f32 %v698_v22, %v690_v48 }
  0xe3   : > { %v724_v35 = vmul.f32 0.6931472, %v1332_v29  ;;  %v726_v54 = vmul.f32 %v1200_v58, %v720_v8  ;;  %vm755_vm10 = vcmp.lt.f32.partialorder %v2117_v41, 8.0  ;;  %v2174_v7 = vmul.f32 0.6931472, %v1334_v61  ;;  %v394_v8 = vld [vmem:[%s1882_s17 + $0x8] sm:$0xff] }
  0xe4   : > { %v703_v38 = vmul.f32 %v699_v51, %v691_v23  ;;  %v778_v40 = vmul.f32 %v774_v12, %v770_v30  ;;  %v782_v56 = vadd.f32 1.0, %v774_v12  ;;  %v705_v33 = vadd.f32 0.083333336, %v701_v9 }
  0xe5   : > { %v727_v57 = vmul.f32 %v1201_v60, %v722_v6  ;;  %v729_v4 = vsub.f32 %v725_v46, %v2057_v39  ;;  %vm756_vm11 = vcmp.lt.f32.partialorder %v2129_v45, 8.0  ;;  %v779_v14 = vmul.f32 %v775_v37, %v771_v55 }
  0xe6   : > { %v780_v17 = vmul.f32 %v776_v0, %v772_v15  ;;  %v783_v31 = vadd.f32 1.0, %v775_v37  ;;  %v784_v18 = vadd.f32 1.0, %v776_v0  ;;  %v785_v48 = vmul.f32 %v781_v50, %v777_v19 }
  0xe7   : > { %v704_v21 = vmul.f32 %v700_v59, %v692_v1  ;;  %v706_v58 = vadd.f32 0.083333336, %v702_v5  ;;  %v728_v44 = vmul.f32 %v2152_v27, %v724_v35  ;;  %v730_v23 = vsub.f32 %v726_v54, %v2063_v2  ;;  %v393_v1 = vld [vmem:[%s1882_s17] sm:$0xff]  ;;  %v396_v5 = vld [vmem:[%s1882_s17 + $0x18] sm:$0xff] }
  0xe8   : > { %v707_v42 = vadd.f32 0.083333336, %v703_v38  ;;  %v786_v9 = vmul.f32 %v782_v56, %v778_v40  ;;  %v789_v60 = vadd.f32 1.0, %v781_v50  ;;  %v790_v28 = vadd.f32 1.0, %v782_v56  ;;  %v2180_v46 = vpop.eup %1337 }
  0xe9   : > { %v709_v39 = vmul.f32 %v2094_v20, %v705_v33  ;;  %v731_v37 = vsub.f32 %v727_v57, %v2068_v49  ;;  %v733_v22 = vadd.f32 0.9189385, %v729_v4  ;;  %v2188_v19 = vsel %vm753_vm8, %v2156_v62, %v2005_v47  ;;  %v2544_v33 = vld [vmem:[#allocation17_spill] sm:$0xff] }
  0xea   : > { %v2190_v59 = vmul.f32 0.6931472, %v1336_v34  ;;  %v787_v2 = vmul.f32 %v783_v31, %v779_v14  ;;  %v788_v54 = vmul.f32 %v784_v18, %v780_v17  ;;  %v791_v27 = vadd.f32 1.0, %v783_v31 }
  0xeb   : > { %v708_v29 = vadd.f32 0.083333336, %v704_v21  ;;  %v710_v51 = vmul.f32 %v2108_v13, %v706_v58  ;;  %v732_v49 = vsub.f32 %v728_v44, %v2076_v16  ;;  %v734_v20 = vadd.f32 0.9189385, %v730_v23 }
  0xec   : > { %v793_v30 = vmul.f32 %v789_v60, %v785_v48  ;;  %v794_v55 = vmul.f32 %v790_v28, %v786_v9  ;;  %v828_v62 = vadd.f32 8.0, %v2129_v45  ;;  %1339 = vrcp.f32 %v2188_v19 }
  0xed   : > { %v711_v12 = vmul.f32 %v2119_v43, %v707_v42  ;;  %v735_v61 = vadd.f32 0.9189385, %v731_v37  ;;  %v2199_v6 = vadd.f32 %v733_v22, %v709_v39  ;;  %v2205_v13 = vsel %vm754_vm9, %v2162_v32, %v2106_v11  ;;  %v395_v43 = vld [vmem:[%s1882_s17 + $0x10] sm:$0xff] }
  0xee   : > { %v792_v0 = vadd.f32 1.0, %v784_v18  ;;  %v2215_v50 = vsel %vm755_vm10, %v2170_v25, %v2117_v41  ;;  %v712_v35 = vmul.f32 %v2142_v10, %v708_v29  ;;  %v736_v38 = vadd.f32 0.9189385, %v732_v49  ;;  %v2545_v42 = vld [vmem:[#allocation18_spill] sm:$0xff] }
  0xef   : > { %v2220_v40 = vadd.f32 %v734_v20, %v710_v51  ;;  %v797_v32 = vadd.f32 1.0, %v789_v60  ;;  %v2229_v4 = vsel %vm756_vm11, %v828_v62, %v2129_v45  ;;  %1341 = vrcp.f32 %v2205_v13  ;;  %v2546_v60 = vld [vmem:[#allocation19_spill] sm:$0xff]  ;;  %v2553_v45 = vld [vmem:[#allocation24_spill] sm:$0xff] }
  0xf0   : > { %v795_v14 = vmul.f32 %v791_v27, %v787_v2  ;;  %v798_v10 = vadd.f32 1.0, %v790_v28  ;;  %v799_v17 = vadd.f32 1.0, %v791_v27  ;;  %1343 = vrcp.f32 %v2215_v50 }
  0xf1   : > { %v796_v58 = vmul.f32 %v792_v0, %v788_v54  ;;  %v800_v44 = vadd.f32 1.0, %v792_v0  ;;  %v801_v23 = vmul.f32 %v797_v32, %v793_v30  ;;  %1345 = vrcp.f32 %v2229_v4 }
  0xf2   : > { %v805_v39 = vadd.f32 1.0, %v797_v32  ;;  %v802_v37 = vmul.f32 %v798_v10, %v794_v55  ;;  %v803_v22 = vmul.f32 %v799_v17, %v795_v14  ;;  %v806_v2 = vadd.f32 1.0, %v798_v10 }
  0xf3   : > { %v2246_v29 = vmul.f32 0.6931472, %v2180_v46  ;;  %v804_v51 = vmul.f32 %v800_v44, %v796_v58  ;;  %v808_v49 = vadd.f32 1.0, %v800_v44  ;;  %v2249_v20 = vadd.f32 %v735_v61, %v711_v12 }
  0xf4   : > { %v741_v30 = vsub.f32 %v2199_v6, %v2166_v24  ;;  %v809_v55 = vmul.f32 %v805_v39, %v801_v23  ;;  %v2253_v62 = vadd.f32 %v736_v38, %v712_v35  ;;  %v742_v12 = vsub.f32 %v2220_v40, %v2174_v7  ;;  %v2547_v6 = vld [vmem:[#allocation27_spill] sm:$0xff]  ;;  %v2548_v38 = vld [vmem:[#allocation30_spill] sm:$0xff]  ;;  %v2550_v7 = vld [vmem:[#allocation28_spill] sm:$0xff] }
  0xf5   : > { %v2301_v39 = vld [vmem:[%s1891_s14] sm:$0xff]  ;;  %v2346_v35 = vld [vmem:[%s1891_s14 + $0x18] sm:$0xff] }
  0xf6   : > { %v2242_v27 = vpop.eup %1339 }
  0xf7   : > { %v837_v0 = vmul.f32 %v2242_v27, %v2242_v27 }
  0xf9   : > { %v2257_v46 = vpop.eup %1341 }
  0xfa   : > { %v2264_v24 = vpop.eup %1343 }
  0xfb   : > { %v2283_v14 = vpop.eup %1345  ;;  %v2297_v23 = vmul.f32 %v2264_v24, %v2264_v24 }
 0x11e   : > { %v402_v34 = vpop.permute.xlu0 %401 }
 0x11f   : > { %v2207_v16 = vmul.f32 %v402_v34, %v393_v1  ;;  %v2209_v15 = vmul.f32 %v402_v34, %v394_v8  ;;  %v807_v8 = vadd.f32 1.0, %v799_v17  ;;  %v810_v34 = vmul.f32 %v806_v2, %v802_v37 }
 0x121   : > { %v433_v56 = vadd.f32 %v1902_v3, %v2207_v16  ;;  %v434_v57 = vadd.f32 %v2544_v33, %v2209_v15  ;;  %v811_v61 = vmul.f32 %v807_v8, %v803_v22  ;;  %v814_v17 = vsel %vm754_vm9, %v810_v34, 1.0 }
 0x122   : > { %v407_v25 = vpop.permute.xlu0 %406  ;;  %v1204_v22 = vadd.f32 -0.5, %v2205_v13 }
 0x123   : > { %v2233_v31 = vmul.f32 %v407_v25, %v395_v43  ;;  %v2235_v18 = vmul.f32 %v407_v25, %v396_v5  ;;  %v437_v48 = vadd.f32 1e-10, %v433_v56  ;;  %v438_v21 = vadd.f32 1e-10, %v434_v57 }
 0x124   : > { %v598_v43 = vsub.f32 %v2110_v36, %v2089_v52  ;;  %v2267_v5 = vmul.f32 0.6931472, %v2547_v6  ;;  %v812_v56 = vmul.f32 %v808_v49, %v804_v51  ;;  %v2549_v36 = vld [vmem:[#allocation29_spill] sm:$0xff]  ;;  %v813_v25 = vsel %vm753_vm8, %v809_v55, 1.0 }
 0x125   : > { %v435_v9 = vadd.f32 %v2545_v42, %v2233_v31  ;;  %v436_v28 = vadd.f32 %v2546_v60, %v2235_v18  ;;  %1347 = vlog2.f32 %v437_v48  ;;  %v2551_v40 = vsub.f32 %v2549_v36, %v2550_v7 }
 0x126   : > { %1349 = vlog2.f32 %v438_v21  ;;  %v838_v48 = vmul.f32 %v2257_v46, %v2257_v46  ;;  %v841_v21 = vmul.f32 0.0007936508, %v837_v0  ;;  %v2291_v44 = vadd.f32 %v742_v12, %v598_v43 }
 0x127   : > { %v439_v1 = vadd.f32 1e-10, %v435_v9  ;;  %v440_v54 = vadd.f32 1e-10, %v436_v28  ;;  %1351 = vlog2.f32 %v2188_v19  ;;  %v2278_v57 = vadd.f32 %v741_v30, %v2551_v40 }
 0x128   : > { %1353 = vlog2.f32 %v2205_v13  ;;  %v815_v47 = vsel %vm755_vm10, %v811_v61, 1.0  ;;  %v1203_v9 = vadd.f32 -0.5, %v2188_v19  ;;  %v816_v37 = vsel %vm756_vm11, %v812_v56, 1.0  ;;  %v2554_v61 = vld [vmem:[#allocation25_spill] sm:$0xff] }
 0x129   : > { %1355 = vlog2.f32 %v439_v1  ;;  %2552 = vst [vmem:[#allocation17_spill] sm:$0xff] %v2278_v57  ;;  %v2312_v1 = vmul.f32 %v2283_v14, %v2283_v14  ;;  %v842_v51 = vmul.f32 0.0007936508, %v838_v48  ;;  %v845_v49 = vadd.f32 -0.0027777778, %v841_v21 }
 0x12a   : > { %1357 = vlog2.f32 %v440_v54  ;;  %v1205_v54 = vadd.f32 -0.5, %v2215_v50  ;;  %v1206_v30 = vadd.f32 -0.5, %v2229_v4  ;;  %v843_v43 = vmul.f32 0.0007936508, %v2297_v23 }
 0x12b   : > { %1359 = vlog2.f32 %v2215_v50  ;;  %v449_v7 = vadd.f32 1e-10, %v2207_v16  ;;  %v450_v21 = vadd.f32 1e-10, %v2209_v15  ;;  %v846_v10 = vadd.f32 -0.0027777778, %v842_v51 }
 0x12c   : > { %1361 = vlog2.f32 %v2229_v4  ;;  %v849_v32 = vmul.f32 %v845_v49, %v837_v0  ;;  %v847_v16 = vadd.f32 -0.0027777778, %v843_v43  ;;  %v452_v52 = vadd.f32 1e-10, %v2235_v18  ;;  %v2338_v51 = vld [vmem:[%s1891_s14 + $0x8] sm:$0xff]  ;;  %v2343_v43 = vld [vmem:[%s1891_s14 + $0x10] sm:$0xff] }
 0x12d   : > { %1363 = vlog2.f32 %v813_v25  ;;  %v926_v57 = vsub.f32 1.0, %v2338_v51 }
 0x12e   : > { %1365 = vlog2.f32 %v814_v17 }
 0x12f   : > { %v1348_v58 = vpop.eup %1347  ;;  %1367 = vlog2.f32 %v815_v47 }
 0x130   : > { %v1350_v28 = vpop.eup %1349  ;;  %v2303_v11 = vmul.f32 0.6931472, %v1348_v58  ;;  %1369 = vlog2.f32 %v816_v37  ;;  %v844_v58 = vmul.f32 0.0007936508, %v2312_v1  ;;  %v2555_v37 = vld [vmem:[#allocation26_spill] sm:$0xff] }
 0x131   : > { %v1352_v2 = vpop.eup %1351  ;;  %v2308_v41 = vmul.f32 0.6931472, %v1350_v28  ;;  %v451_v28 = vadd.f32 1e-10, %v2233_v31  ;;  %1371 = vlog2.f32 %v449_v7 }
 0x132   : > { %v1354_v8 = vpop.eup %1353  ;;  %v945_v55 = vsub.f32 %v2553_v45, %v2303_v11  ;;  %v866_v40 = vmul.f32 0.6931472, %v1352_v2  ;;  %1373 = vlog2.f32 %v450_v21 }
 0x133   : > { %v1356_v34 = vpop.eup %1355  ;;  %v946_v6 = vsub.f32 %v2554_v61, %v2308_v41  ;;  %1375 = vlog2.f32 %v451_v28 }
 0x134   : > { %v1358_v56 = vpop.eup %1357  ;;  %v2322_v36 = vmul.f32 0.6931472, %v1356_v34  ;;  %v949_v47 = vmul.f32 %v945_v55, %v1902_v3  ;;  %v868_v34 = vmul.f32 0.6931472, %v1354_v8  ;;  %v873_v31 = vmul.f32 %v1203_v9, %v866_v40 }
 0x135   : > { %v1360_v25 = vpop.eup %1359  ;;  %v2325_v17 = vmul.f32 0.6931472, %v1358_v56  ;;  %v950_v56 = vmul.f32 %v946_v6, %v2544_v33  ;;  %v848_v33 = vadd.f32 -0.0027777778, %v844_v58  ;;  %v850_v6 = vmul.f32 %v846_v10, %v838_v48 }
 0x136   : > { %v1362_v12 = vpop.eup %1361  ;;  %v947_v2 = vsub.f32 %v2555_v37, %v2322_v36  ;;  %v870_v3 = vmul.f32 0.6931472, %v1360_v25  ;;  %v953_v49 = vmul.f32 1.442695, %v949_v47  ;;  %v874_v21 = vmul.f32 %v1204_v22, %v868_v34 }
 0x137   : > { %v948_v15 = vsub.f32 %v2267_v5, %v2325_v17  ;;  %v1364_v55 = vpop.eup %1363  ;;  %v872_v18 = vmul.f32 0.6931472, %v1362_v12  ;;  %v955_v9 = vmul.f32 1.442695, %v950_v56  ;;  %v2556_v48 = vsub.f32 %v2121_v53, %v2100_v26  ;;  %v2559_v56 = vld [vmem:[#allocation20_spill] sm:$0xff] }
 0x138   : > { %v951_v0 = vmul.f32 %v947_v2, %v2545_v42  ;;  %v1366_v7 = vpop.eup %1365  ;;  %1377 = vpow2.f32 %v953_v49  ;;  %v851_v42 = vmul.f32 %v847_v16, %v2297_v23  ;;  %v853_v2 = vadd.f32 0.083333336, %v849_v32  ;;  %v1403_v16 = vld [vmem:[%s1888_s11] sm:$0xff]  ;;  %v1405_v49 = vld [vmem:[%s1888_s11 + $0x10] sm:$0xff] }
 0x139   : > { %v952_v8 = vmul.f32 %v948_v15, %v2546_v60  ;;  %1379 = vlog2.f32 %v452_v52  ;;  %v875_v60 = vmul.f32 %v1205_v54, %v870_v3  ;;  %v1368_v47 = vpop.eup %1367  ;;  %v877_v15 = vsub.f32 %v873_v31, %v2188_v19  ;;  %v1404_v31 = vld [vmem:[%s1888_s11 + $0x8] sm:$0xff] }
 0x13a   : > { %v957_v40 = vmul.f32 1.442695, %v951_v0  ;;  %1381 = vpow2.f32 %v955_v9  ;;  %v1370_v10 = vpop.eup %1369  ;;  %v2557_v12 = vsub.f32 %v2249_v20, %v2190_v59  ;;  %v927_v23 = vsub.f32 1.0, %v2343_v43  ;;  %v2560_v0 = vld [vmem:[#allocation21_spill] sm:$0xff] }
 0x13b   : > { %v959_v25 = vmul.f32 1.442695, %v952_v8  ;;  %v928_v22 = vsub.f32 1.0, %v2346_v35  ;;  %v852_v19 = vmul.f32 %v848_v33, %v2312_v1  ;;  %v876_v32 = vmul.f32 %v1206_v30, %v872_v18  ;;  %v1372_v30 = vpop.eup %1371  ;;  %v2561_v33 = vld [vmem:[#allocation22_spill] sm:$0xff]  ;;  %v2562_v18 = vld [vmem:[#allocation23_spill] sm:$0xff] }
 0x13c   : > { %v2357_v52 = vadd.f32 %v2557_v12, %v2556_v48  ;;  %1383 = vpow2.f32 %v957_v40  ;;  %v2558_v54 = vsub.f32 1.0, %v2301_v39  ;;  %v854_v26 = vadd.f32 0.083333336, %v850_v6  ;;  %v1374_v9 = vpop.eup %1373 }
 0x13d   : > { %1385 = vpow2.f32 %v959_v25  ;;  %v855_v53 = vadd.f32 0.083333336, %v851_v42  ;;  %v878_v59 = vsub.f32 %v874_v21, %v2205_v13  ;;  %v879_v20 = vsub.f32 %v875_v60, %v2215_v50  ;;  %v1406_v13 = vld [vmem:[%s1888_s11 + $0x18] sm:$0xff]  ;;  %v1376_v21 = vpop.eup %1375 }
 0x13e   : > { %v929_v58 = vadd.f32 1e-10, %v2558_v54  ;;  %v857_v28 = vmul.f32 %v2242_v27, %v853_v2  ;;  %v881_v34 = vadd.f32 0.9189385, %v877_v15  ;;  %v2369_v3 = vadd.f32 %v1403_v16, %v2559_v56 }
 0x13f   : > { %v930_v1 = vadd.f32 1e-10, %v926_v57  ;;  %v2373_v8 = vadd.f32 %v1404_v31, %v2560_v0  ;;  %v2377_v6 = vadd.f32 %v1405_v49, %v2561_v33  ;;  %v2381_v50 = vadd.f32 %v1406_v13, %v2562_v18 }
 0x140   : > { %v931_v27 = vadd.f32 1e-10, %v927_v23  ;;  %v856_v40 = vadd.f32 0.083333336, %v852_v19  ;;  %v880_v25 = vsub.f32 %v876_v32, %v2229_v4  ;;  %v932_v42 = vadd.f32 1e-10, %v928_v22 }
 0x141   : > { %1387 = vlog2.f32 %v929_v58  ;;  %v858_v60 = vmul.f32 %v2257_v46, %v854_v26  ;;  %v859_v2 = vmul.f32 %v2264_v24, %v855_v53  ;;  %v882_v15 = vadd.f32 0.9189385, %v878_v59 }
 0x142   : > { %v883_v48 = vadd.f32 0.9189385, %v879_v20  ;;  %v1378_v12 = vpop.eup %1377  ;;  %v2386_v54 = vmul.f32 0.6931472, %v1364_v55  ;;  %v2388_v16 = vadd.f32 %v881_v34, %v857_v28  ;;  %1389 = vlog2.f32 %v930_v1 }
 0x143   : > { %v993_v56 = vlaneseq  ;;  %v1380_v31 = vpop.eup %1379  ;;  %v820_v19 = vmul.f32 0.6931472, %v1366_v7  ;;  %v2390_v0 = vmul.f32 0.6931472, %v1368_v47  ;;  %1391 = vlog2.f32 %v931_v27 }
 0x144   : > { %v2563_v4 = vsub.f32 1.0, %v2301_v39  ;;  %v1382_v46 = vpop.eup %1381  ;;  %v2394_v58 = vmul.f32 0.6931472, %v1370_v10  ;;  %v860_v24 = vmul.f32 %v2283_v14, %v856_v40  ;;  %v884_v26 = vadd.f32 0.9189385, %v880_v25 }
 0x145   : > { %1393 = vlog2.f32 %v932_v42  ;;  %v886_v53 = vadd.f32 %v882_v15, %v858_v60  ;;  %v887_v59 = vadd.f32 %v883_v48, %v859_v2  ;;  %v962_v20 = vmul.f32 %v1382_v46, %v926_v57 }
 0x146   : > { %v961_v32 = vmul.f32 %v1378_v12, %v2563_v4  ;;  %v1384_v55 = vpop.eup %1383  ;;  %v454_v47 = vmul.f32 0.6931472, %v1372_v30  ;;  %v456_v34 = vmul.f32 0.6931472, %v1374_v9  ;;  %v889_v1 = vsub.f32 %v2388_v16, %v2386_v54  ;;  %v1407_v54 = vld [vmem:[%s1875_s9 + $0x8] sm:$0xff]  ;;  %v1410_v4 = vld [vmem:[%s1875_s9 + $0x18] sm:$0xff] }
 0x147   : > { %v1386_v7 = vpop.eup %1385  ;;  %v963_v49 = vmul.f32 %v1384_v55, %v927_v23  ;;  %v458_v33 = vmul.f32 0.6931472, %v1376_v21  ;;  %v966_v13 = vadd.f32 %v962_v20, %v2338_v51  ;;  %v460_v18 = vmul.f32 0.6931472, %v1380_v31  ;;  %v1408_v31 = vld [vmem:[%s1875_s9] sm:$0xff] }
 0x148   : > { %v965_v28 = vadd.f32 %v961_v32, %v2301_v39  ;;  %v964_v10 = vmul.f32 %v1386_v7, %v928_v22  ;;  %v901_v27 = vsub.f32 %v2303_v11, %v2553_v45  ;;  %v902_v57 = vsub.f32 %v2308_v41, %v2554_v61 }
 0x149   : > { %v967_v39 = vadd.f32 %v963_v49, %v2343_v43  ;;  %v903_v30 = vsub.f32 %v2322_v36, %v2555_v37  ;;  %v970_v23 = vadd.f32 1e-10, %v966_v13  ;;  %v888_v40 = vadd.f32 %v884_v26, %v860_v24 }
 0x14a   : > { %v969_v14 = vadd.f32 1e-10, %v965_v28  ;;  %v968_v9 = vadd.f32 %v964_v10, %v2346_v35  ;;  %v904_v51 = vsub.f32 %v2325_v17, %v2267_v5  ;;  %v910_v25 = vsub.f32 %v2554_v61, %v456_v34 }
 0x14b   : > { %v1388_v22 = vpop.eup %1387  ;;  %v971_v11 = vadd.f32 1e-10, %v967_v39  ;;  %v909_v42 = vsub.f32 %v2553_v45, %v454_v47  ;;  %v911_v41 = vsub.f32 %v2555_v37, %v458_v33  ;;  %v890_v35 = vsub.f32 %v886_v53, %v820_v19 }
 0x14c   : > { %1395 = vlog2.f32 %v969_v14  ;;  %v972_v43 = vadd.f32 1e-10, %v968_v9  ;;  %v1390_v36 = vpop.eup %1389  ;;  %v906_v21 = vmul.f32 %v902_v57, %v2373_v8  ;;  %v912_v60 = vsub.f32 %v2267_v5, %v460_v18 }
 0x14d   : > { %1397 = vlog2.f32 %v970_v23  ;;  %v1392_v17 = vpop.eup %1391  ;;  %v891_v61 = vsub.f32 %v887_v59, %v2390_v0  ;;  %v905_v45 = vmul.f32 %v901_v27, %v2369_v3  ;;  %v907_v37 = vmul.f32 %v903_v30, %v2377_v6  ;;  %v1409_v3 = vld [vmem:[%s1875_s9 + $0x10] sm:$0xff]  ;;  %s1531_s9 = scalar_lea.vmem %s2443_s0, 16 }
 0x14e   : > { %1399 = vlog2.f32 %v971_v11  ;;  %v2564_v15 = vsub.f32 %v2548_v38, %v2102_v63  ;;  %v2565_v8 = vsub.f32 %v2253_v62, %v2246_v29  ;;  %v892_v5 = vsub.f32 %v888_v40, %v2394_v58  ;;  %v2566_v38 = vld [vmem:[#allocation17_spill] sm:$0xff]  ;;  %p1532_p3 = scmp.ne.s32.totalorder %s2443_s0, %s1531_s9  ;;  %p1539_p2 = scmp.lt.s32.totalorder %s1537_s26, %s1531_s9 }
 0x14f   : > { %1401 = vlog2.f32 %v972_v43  ;;  %v1394_v2 = vpop.eup %1393  ;;  %v908_v12 = vmul.f32 %v904_v51, %v2381_v50  ;;  %v914_v16 = vmul.f32 %v1407_v54, %v910_v25  ;;  %v913_v19 = vmul.f32 %v1408_v31, %v909_v42 }
 0x150   : > { %v748_v48 = vadd.f32 %v2565_v8, %v2564_v15  ;;  %v915_v0 = vmul.f32 %v1409_v3, %v911_v41  ;;  %v894_v6 = vsub.f32 %v2291_v44, %v890_v35  ;;  %v916_v32 = vmul.f32 %v1410_v4, %v912_v60  ;;  %p1533_p9 = pnand %p1532_p3, %p2567_p8  ;;  %p1540_p4 = por %p1539_p2, %p1538_p7 }
 0x151   : > { %v918_v46 = vadd.f32 %v914_v16, %v906_v21  ;;  %v994_v63 = vand.u32 127, %v993_v56  ;;  %v893_v29 = vsub.f32 %v2566_v38, %v889_v1  ;;  %v895_v62 = vsub.f32 %v2357_v52, %v891_v61 }
 0x152   : > { %v917_v58 = vadd.f32 %v913_v19, %v905_v45  ;;  %v919_v24 = vadd.f32 %v915_v0, %v907_v37  ;;  %v896_v50 = vsub.f32 %v748_v48, %v892_v5  ;;  %v920_v26 = vadd.f32 %v916_v32, %v908_v12  ;;  %p1534_p11 = pneg %p1533_p9 }
 0x153   : > { %vm985_vm12 = vcmp.le.f32.partialorder %v1408_v31, 1e-08  ;;  %v922_v53 = vadd.f32 %v918_v46, %v894_v6  ;;  %v936_v59 = vmul.f32 0.6931472, %v1390_v36  ;;  %v995_v28 = vadd.s32 128, %v994_v63 }
 0x154   : > { %v921_v7 = vadd.f32 %v917_v58, %v893_v29  ;;  %v923_v47 = vadd.f32 %v919_v24, %v895_v62  ;;  %v934_v34 = vmul.f32 0.6931472, %v1388_v22  ;;  %v938_v49 = vmul.f32 0.6931472, %v1392_v17  ;;  %p1541_p0 = pnand %p1540_p4, %p1534_p11 }
 0x155   : > { %v924_v33 = vadd.f32 %v920_v26, %v896_v50  ;;  %v940_v1 = vmul.f32 0.6931472, %v1394_v2  ;;  %vm986_vm13 = vcmp.le.f32.partialorder %v1407_v54, 1e-08  ;;  %vm987_vm14 = vcmp.le.f32.partialorder %v1409_v3, 1e-08 }
 0x156   : > { %v1396_v55 = vpop.eup %1395  ;;  %v942_v18 = vsub.f32 %v922_v53, %v936_v59  ;;  %vm997_vm15 = vcmp.lt.s32.totalorder %v995_v28, 200  ;;  %v941_v39 = vsub.f32 %v921_v7, %v934_v34  ;;  %v943_v30 = vsub.f32 %v923_v47, %v938_v49 }
 0x157   : > { %v974_v20 = vmul.f32 0.6931472, %v1396_v55  ;;  %v1398_v44 = vpop.eup %1397  ;;  %vm988_vm0 = vcmp.le.f32.partialorder %v1410_v4, 1e-08  ;;  %v944_v23 = vsub.f32 %v924_v33, %v940_v1 }
 0x158   : > { %v1400_v56 = vpop.eup %1399  ;;  %v976_v10 = vmul.f32 0.6931472, %v1398_v44 }
 0x159   : > { %v1402_v52 = vpop.eup %1401  ;;  %v978_v13 = vmul.f32 0.6931472, %v1400_v56  ;;  %v981_v14 = vsub.f32 0.0, %v974_v20 }
 0x15a   : > { %v980_v27 = vmul.f32 0.6931472, %v1402_v52  ;;  %v982_v57 = vsub.f32 0.0, %v976_v10 }
 0x15b   : > { %v983_v9 = vsub.f32 0.0, %v978_v13  ;;  %v989_v51 = vsel %vm985_vm12, %v981_v14, %v941_v39 }
 0x15c   : > { %v984_v22 = vsub.f32 0.0, %v980_v27  ;;  %v990_v40 = vsel %vm986_vm13, %v982_v57, %v942_v18 }
 0x15d   : > { %v991_v25 = vsel %vm987_vm14, %v983_v9, %v943_v30  ;;  %v999_v11 = vsel %vm997_vm15, %v990_v40, 0.0 }
 0x15e   : > { %v992_v42 = vsel %vm988_vm0, %v984_v22, %v944_v23  ;;  %v1002_v43 = vadd.f32 %v999_v11, %v989_v51 }
 0x15f   : > { %v1001_v41 = vsel %vm997_vm15, %v992_v42, 0.0 }
 0x160   : > { %v1003_v36 = vadd.f32 %v1001_v41, %v991_v25 }
 0x162   : > { %v1004_v35 = vadd.f32 %v1003_v36, %v1002_v43 }
 0x164   : > { %v1005_v21 = vrot.slane %v1004_v35, 4 }
 0x166   : > { %v1006_v60 = vadd.f32 %v1005_v21, %v1004_v35 }
 0x168   : > { %v1007_v17 = vrot.slane %v1006_v60, 2 }
 0x16a   : > { %v1008_v61 = vadd.f32 %v1007_v17, %v1006_v60 }
 0x16c   : > { %v1009_v45 = vrot.slane %v1008_v61, 1 }
 0x16e   : > { %v1010_v37 = vadd.f32 %v1009_v45, %v1008_v61 }
 0x170   : > { %1011 = vst [vmem:[%s378_s8] sm:$0x1] %v1010_v37 }
 0x171   : > { %1544 = shalt.err (!%p1541_p0)
}
 0x172   : > { %s1545_s23 = scalar_lea.hbm %s2441_s10, 16  ;;  %s1549_s13 = scalar_lea.hbm %s2489_s5, 48 }
 0x173   : > { %p1546_p5 = scmp.ne.s32.totalorder %s2441_s10, %s1545_s23  ;;  %p1550_p1 = scmp.lt.u32.totalorder %s2441_s10, %s2489_s5 }
 0x174   : > { %p1551_p6 = scmp.lt.u32.totalorder %s1549_s13, %s1545_s23  ;;  %p1553_p3 = scmp.lt.u32.totalorder %s1545_s23, %s2441_s10 }
 0x175   : > { %p1547_p10 = pnand %p1546_p5, %p2567_p8 }
 0x176   : > { %p1552_p12 = por %p1551_p6, %p1550_p1 }
 0x177   : > { %p1548_p13 = pneg %p1547_p10 }
 0x178   : > { %p1554_p9 = por %p1553_p3, %p1552_p12 }
 0x17a   : > { %p1555_p11 = pnand %p1554_p9, %p1548_p13 }
 0x17c   : > { %1558 = shalt.err (!%p1555_p11)
}
 0x17d   : > { %1226 = dma.vmem_to_hbm [thread:$0]  (%p2567_p8), %s2443_s0, 16, %s2441_s10, %s1013_s16  }
 0x17e PF: > { %p1246_p7 = scmp.ge.s32.totalorder %s1605_s21, 2  ;;  %s1037_s12 = sand.u32 1, %s1593_s18  }
 0x17f   : > { %p2568_p2 = scmp.ne.s32.totalorder %s2519_s30, 0  ;;  %s1038_s27 = scalar_lea.sflag [#allocation4], %s1037_s12 }
 0x181   : > { %p1242_p4 = pnand %p1246_p7, %p2568_p2 }
 0x183   : > { %1588 = dma.done.wait (!%p1242_p4), %s1038_s27, 16  }
 0x184   : > { %1590 = vsyncadd (!%p1242_p4), %s1038_s27, 4294967280  ;;  %s2569_s7 = sld [smem:[#allocation15_spill]]  ;;  %s2570_s20 = sld [smem:[#allocation16_spill]] }
 0x185   : > { %p24_p0 = scmp.ge.s32.totalorder %s1670_s24, 5   ;;  %s2571_s18 = smov %s1597_s19 }
 0x186   : > { %s2573_s21 = smov %s1670_s24 }
 0x187   :  { %26 = sbr.rel (!%p24_p0) target bundleno = 12 (0xc), region = 125 }
 0x18a   : > { %s2572_s19 = smov %s2569_s7 }
 0x18e   :  { %1042 = vsyncpa [#allocation3], 1 }
 0x18f   :  { %1044 = vsyncpa [#allocation3 + $0x1], 1 }
 0x190   :  { %1045 = vsyncpa [#allocation6], 1 }
 0x191   :  { %1047 = vsyncpa [#allocation6 + $0x1], 1 }
 0x192   :  { %1048 = vsyncpa [#allocation9], 1 }
 0x193   :  { %1050 = vsyncpa [#allocation9 + $0x1], 1 }
 0x194   :  { %1051 = vsyncpa [#allocation4], 1 }
 0x195   :  { %1053 = vsyncpa [#allocation4 + $0x1], 1 }

</bundles_post_ra>
